<compile_context>
chip_gen: v7x
topology: tpu7x:2x2x1
jax: 0.10.0
libtpu: 0.0.40
codegen_flags: <defaults>
</compile_context>

<pallas_src>
import math
import functools

import jax
import jax.numpy as jnp
from jax.experimental import pallas as pl
from jax.experimental.pallas import tpu as pltpu


def _tpu_generation():
    """Best-effort TPU generation from device_kind (None if unknown)."""
    try:
        kind = jax.devices()[0].device_kind.lower()
    except Exception:
        return None
    for g in (7, 6, 5, 4):
        if "v{}".format(g) in kind:
            return g
    return None


def _block_attn_kernel(*refs, nhead, fused, compute_dtype):
    if fused:
        x_ref, w_ref, b_ref, out_ref, attn_ref = refs
        lead_ref = x_ref
    else:
        q_ref, k_ref, v_ref, w_ref, b_ref, out_ref, attn_ref = refs
        lead_ref = q_ref

    T, Blk, D = lead_ref.shape
    H = nhead
    dh = D // H
    rows = T * Blk

    w = w_ref[...]          # (D, 3D), compute_dtype; 1/sqrt(dh) folded into Wq
    b = b_ref[...]          # (1, 3D), f32

    # Fused projections over all T*Blk rows of this grid step.
    if fused:
        x = x_ref[...].reshape(rows, D)
        qkv = jnp.dot(x, w, preferred_element_type=jnp.float32) + b
        Q = qkv[:, :D]
        K = qkv[:, D:2 * D]
        V = qkv[:, 2 * D:]
    else:
        Q = jnp.dot(q_ref[...].reshape(rows, D), w[:, :D],
                    preferred_element_type=jnp.float32) + b[:, :D]
        K = jnp.dot(k_ref[...].reshape(rows, D), w[:, D:2 * D],
                    preferred_element_type=jnp.float32) + b[:, D:2 * D]
        V = jnp.dot(v_ref[...].reshape(rows, D), w[:, 2 * D:],
                    preferred_element_type=jnp.float32) + b[:, 2 * D:]

    # Head-major re-layout: (rows, D) -> (H*T, Blk, dh) via per-head lane
    # slices stacked along the (cheap) leading axis.
    def to_heads(M):
        parts = [M[:, h * dh:(h + 1) * dh].reshape(T, Blk, dh) for h in range(H)]
        return jnp.concatenate(parts, axis=0).astype(compute_dtype)

    Qh = to_heads(Q)
    Kh = to_heads(K)
    Vh = to_heads(V)

    # Single batched score matmul + ONE softmax chain over all (head, block)s.
    s = jnp.einsum('bqd,bkd->bqk', Qh, Kh,
                   preferred_element_type=jnp.float32)          # (H*T, Blk, Blk)
    s = s - jnp.max(s, axis=-1, keepdims=True)                  # stable softmax
    p = jnp.exp(s)
    attn = p / jnp.sum(p, axis=-1, keepdims=True)               # exact reciprocal
    o = jnp.einsum('bqk,bkd->bqd', attn.astype(compute_dtype), Vh,
                   preferred_element_type=jnp.float32)          # (H*T, Blk, dh)

    # Head merge (lane concat) back to (T, Blk, D) / (T, Blk, H*Blk), then
    # flatten to lane-dense 2-D slabs -> single wide store per output per step.
    out3 = jnp.concatenate([o[h * T:(h + 1) * T] for h in range(H)], axis=-1)
    a3 = jnp.concatenate([attn[h * T:(h + 1) * T] for h in range(H)], axis=-1)
    out_ref[...] = out3.reshape(T, Blk * D).astype(out_ref.dtype)
    attn_ref[...] = a3.reshape(T, Blk * H * Blk).astype(attn_ref.dtype)


def _choose_tile(bs, blk, d, nhead, n_streams, in_isz, gen, target_rows):
    """Pick (T, grid, BS_pad, vmem_limit_bytes): T fused (b,s)-blocks per step."""
    # Generation-aware VMEM allowance: v7x has 64 MiB/TC (vs 128 on v5e/v6e).
    if gen is not None and gen in (5, 6):
        vmem_limit = 80 * 1024 * 1024
    else:
        vmem_limit = 48 * 1024 * 1024
    budget = int(vmem_limit * 0.7)
    dh = max(1, d // nhead)
    # Double-buffered packed weight/bias (grid-invariant, 2 bufs still allocated).
    fixed = 2 * (d * 3 * d * in_isz + 3 * d * 4)
    # Per-block bytes: double-buffered token tiles + output slabs, plus a rough
    # allowance for in-kernel f32 temporaries (Q/K/V, head-major copies, scores).
    per_t = 2 * (n_streams * blk * d * in_isz + blk * d * 4 + nhead * blk * blk * 4)
    per_t += 4 * (6 * blk * d + 3 * nhead * blk * blk + nhead * blk * dh)
    t_cap = max(1, (budget - fixed) // per_t)
    t_cap = max(1, min(t_cap, max(1, target_rows // blk)))
    t = min(bs, t_cap)
    g = pl.cdiv(bs, t)
    if gen is not None and gen >= 7 and bs >= 32:
        # 2 TensorCores/chip: keep the parallel grid even and >= 4.
        g = max(4, g)
        g += g % 2
        t = pl.cdiv(bs, g)
    g = pl.cdiv(bs, t)
    if g > 1:
        # Tiled (grid > 1) 2-D output blocks need a sublane-aligned row count.
        t = max(8, ((t + 7) // 8) * 8)
        g = pl.cdiv(bs, t)
        if gen is not None and gen >= 7 and g > 1:
            g += g % 2
    bs_pad = g * t
    return t, g, bs_pad, vmem_limit


def multihead_block_attention(query, key, value, params, nhead, *,
                              compute_dtype=None, target_rows=1024,
                              attn_layout="torch"):
    """query/key/value: (B, S, Blk, D) float32.

    Returns (attn_output (B,S,Blk,D) f32, attn_weight).
    attn_layout="torch"  -> attn_weight is (B, nhead, S, Blk, Blk) (module layout).
    attn_layout="packed" -> attn_weight is (B, S, Blk, nhead, Blk) (no extra
                            HBM transpose round trip).
    compute_dtype=None   -> bf16 on v6e/v7x, f32 on v5e / unknown.
    """
    B, S, Blk, D = query.shape
    assert D % nhead == 0, "d_model must be divisible by nhead"
    dh = D // nhead
    BS = B * S
    gen = _tpu_generation()
    if compute_dtype is None:
        compute_dtype = jnp.bfloat16 if (gen is not None and gen >= 6) else jnp.float32
    in_isz = jnp.dtype(compute_dtype).itemsize

    fused = (query is key) and (key is value)       # self-attention fast path
    n_streams = 1 if fused else 3

    T, g, BS_pad, vmem_limit = _choose_tile(
        BS, Blk, D, nhead, n_streams, in_isz, gen, target_rows)

    wq, bq, wk, bk, wv, bv = params
    scale = 1.0 / math.sqrt(dh)
    # Pack [Wq*scale | Wk | Wv] -> (D, 3D); biases stay f32.
    w_packed = jnp.concatenate([wq * scale, wk, wv], axis=1).astype(compute_dtype)
    b_packed = jnp.concatenate([bq * scale, bk, bv], axis=1).astype(jnp.float32)

    def prep(x):
        x = x.reshape(BS, Blk, D).astype(compute_dtype)
        if BS_pad != BS:
            x = jnp.pad(x, ((0, BS_pad - BS), (0, 0), (0, 0)))
        return x

    tok_spec = pl.BlockSpec((T, Blk, D), lambda i: (i, 0, 0))
    w_spec = pl.BlockSpec((D, 3 * D), lambda i: (0, 0))     # VMEM-resident weights
    b_spec = pl.BlockSpec((1, 3 * D), lambda i: (0, 0))

    if fused:
        inputs = (prep(query), w_packed, b_packed)
        in_specs = [tok_spec, w_spec, b_spec]
    else:
        inputs = (prep(query), prep(key), prep(value), w_packed, b_packed)
        in_specs = [tok_spec, tok_spec, tok_spec, w_spec, b_spec]

    kernel = functools.partial(_block_attn_kernel, nhead=nhead, fused=fused,
                               compute_dtype=compute_dtype)

    out_slab, attn_slab = pl.pallas_call(
        kernel,
        out_shape=(
            jax.ShapeDtypeStruct((BS_pad, Blk * D), jnp.float32),
            jax.ShapeDtypeStruct((BS_pad, Blk * nhead * Blk), jnp.float32),
        ),
        grid=(g,),
        in_specs=in_specs,
        out_specs=(
            pl.BlockSpec((T, Blk * D), lambda i: (i, 0)),
            pl.BlockSpec((T, Blk * nhead * Blk), lambda i: (i, 0)),
        ),
        compiler_params=pltpu.CompilerParams(
            dimension_semantics=("parallel",),
            vmem_limit_bytes=vmem_limit),
    )(*inputs)

    attn_out = out_slab[:BS].reshape(B, S, Blk, D)
    attn_packed = attn_slab[:BS].reshape(B, S, Blk, nhead, Blk)
    if attn_layout == "packed":
        return attn_out, attn_packed
    # PyTorch layout (B, nhead, S, Blk, Blk): one XLA transpose of the slab.
    return attn_out, attn_packed.transpose(0, 3, 1, 2, 4)


def _reference(query, key, value, params, nhead):
    """Pure-JAX reference mirroring the PyTorch forward (f32, highest precision)."""
    wq, bq, wk, bk, wv, bv = params
    B, S, Blk, D = query.shape
    dh = D // nhead
    with jax.default_matmul_precision("highest"):
        Q = query @ wq + bq
        K = key @ wk + bk
        V = value @ wv + bv
        Qh = Q.reshape(B, S, Blk, nhead, dh).transpose(0, 3, 1, 2, 4)
        Kh = K.reshape(B, S, Blk, nhead, dh).transpose(0, 3, 1, 2, 4)
        Vh = V.reshape(B, S, Blk, nhead, dh).transpose(0, 3, 1, 2, 4)
        scores = jnp.einsum("bhsqd,bhskd->bhsqk", Qh, Kh) / math.sqrt(dh)
        attn = jax.nn.softmax(scores, axis=-1)
        out = jnp.einsum("bhsqk,bhskd->bhsqd", attn, Vh)
    out = out.transpose(0, 2, 3, 1, 4).reshape(B, S, Blk, D)
    return out, attn


def make_params(key, d_model):
    """Deterministic Linear params; weights stored as (D_in, D_out)."""
    ks = jax.random.split(key, 6)
    bound = 1.0 / math.sqrt(d_model)

    def u(k, shape):
        return jax.random.uniform(k, shape, jnp.float32, -bound, bound)

    wq = u(ks[0], (d_model, d_model)); bq = u(ks[1], (1, d_model))
    wk = u(ks[2], (d_model, d_model)); bk = u(ks[3], (1, d_model))
    wv = u(ks[4], (d_model, d_model)); bv = u(ks[5], (1, d_model))
    return (wq, bq, wk, bk, wv, bv)


if __name__ == "__main__":
    B, S, Blk, D, nhead = 2, 4, 8, 32, 4

    root = jax.random.PRNGKey(0)
    k_q, k_k, k_v, k_p = jax.random.split(root, 4)
    query = jax.random.normal(k_q, (B, S, Blk, D), jnp.float32)
    key = jax.random.normal(k_k, (B, S, Blk, D), jnp.float32)
    value = jax.random.normal(k_v, (B, S, Blk, D), jnp.float32)
    params = make_params(k_p, D)

    # --- cross-attention path (separate q/k/v streams), explicit f32 compute ---
    out, attn_w = multihead_block_attention(query, key, value, params, nhead,
                                            compute_dtype=jnp.float32)
    jax.block_until_ready((out, attn_w))
    ref_out, ref_attn = _reference(query, key, value, params, nhead)
    assert out.shape == (B, S, Blk, D)
    assert attn_w.shape == (B, nhead, S, Blk, Blk)
    assert jnp.allclose(out, ref_out, atol=2e-3, rtol=2e-3)
    assert jnp.allclose(attn_w, ref_attn, atol=2e-3, rtol=2e-3)

    # --- self-attention path exercises the fused (D, 3D) QKV projection ---
    out_s, attn_s = multihead_block_attention(query, query, query, params, nhead,
                                              compute_dtype=jnp.float32)
    jax.block_until_ready((out_s, attn_s))
    ref_out_s, ref_attn_s = _reference(query, query, query, params, nhead)
    assert jnp.allclose(out_s, ref_out_s, atol=2e-3, rtol=2e-3)
    assert jnp.allclose(attn_s, ref_attn_s, atol=2e-3, rtol=2e-3)

    # --- generation-default compute dtype (bf16 on v6e/v7x): looser tolerance ---
    out_a, attn_a = multihead_block_attention(query, key, value, params, nhead)
    jax.block_until_ready((out_a, attn_a))
    assert jnp.allclose(out_a, ref_out, atol=5e-2, rtol=5e-2)
    assert jnp.allclose(attn_a, ref_attn, atol=5e-2, rtol=5e-2)

    # TODO(synk): self.dropout exists in __init__ but is never applied in the
    # PyTorch forward, so no dropout is implemented here.
    print("KERNEL_OK")
</pallas_src>

<mosaic_0001>
module attributes {stable_mosaic.version = 11 : i64} {
  func.func @_block_attn_kernel(%arg0: i32, %arg1: memref<8x8x32xf32, #tpu.memory_space<vmem>>, %arg2: memref<8x8x32xf32, #tpu.memory_space<vmem>>, %arg3: memref<8x8x32xf32, #tpu.memory_space<vmem>>, %arg4: memref<32x96xf32, #tpu.memory_space<vmem>>, %arg5: memref<1x96xf32, #tpu.memory_space<vmem>>, %arg6: memref<8x256xf32, #tpu.memory_space<vmem>>, %arg7: memref<8x256xf32, #tpu.memory_space<vmem>>) attributes {dimension_semantics = [#tpu.dimension_semantics<parallel>], iteration_bounds = array<i64: 1>, scalar_prefetch = 0 : i64, scratch_operands = 0 : i64, tpu.core_type = #tpu.core_type<tc>, window_params = [{transform_indices = @transform_0, window_bounds = array<i64: 8, 8, 32>}, {transform_indices = @transform_1, window_bounds = array<i64: 8, 8, 32>}, {transform_indices = @transform_2, window_bounds = array<i64: 8, 8, 32>}, {pipeline_mode = #tpu.pipeline_mode<synchronous>, transform_indices = @transform_3, window_bounds = array<i64: 32, 96>}, {pipeline_mode = #tpu.pipeline_mode<synchronous>, transform_indices = @transform_4, window_bounds = array<i64: 1, 96>}, {transform_indices = @transform_5, window_bounds = array<i64: 8, 256>}, {transform_indices = @transform_6, window_bounds = array<i64: 8, 256>}]} {
    %c0 = arith.constant 0 : index
    %c0_0 = arith.constant 0 : index
    %0 = vector.load %arg4[%c0, %c0_0] : memref<32x96xf32, #tpu.memory_space<vmem>>, vector<32x96xf32>
    %c0_1 = arith.constant 0 : index
    %c0_2 = arith.constant 0 : index
    %1 = vector.load %arg5[%c0_1, %c0_2] : memref<1x96xf32, #tpu.memory_space<vmem>>, vector<1x96xf32>
    %c0_3 = arith.constant 0 : index
    %c0_4 = arith.constant 0 : index
    %c0_5 = arith.constant 0 : index
    %2 = vector.load %arg1[%c0_3, %c0_4, %c0_5] : memref<8x8x32xf32, #tpu.memory_space<vmem>>, vector<8x8x32xf32>
    %3 = vector.shape_cast %2 : vector<8x8x32xf32> to vector<64x32xf32>
    %4 = vector.extract_strided_slice %0 {offsets = [0, 0], sizes = [32, 32], strides = [1, 1]} : vector<32x96xf32> to vector<32x32xf32>
    %cst = arith.constant dense<0.000000e+00> : vector<64x32xf32>
    %5 = tpu.matmul %3, %4, %cst {dimension_numbers = #tpu.dot_dimension_numbers<[1], [0], [0], [1], [0, 0, 1, 1], [], []>} : vector<64x32xf32>, vector<32x32xf32>, vector<64x32xf32> -> vector<64x32xf32>
    %6 = vector.extract_strided_slice %1 {offsets = [0, 0], sizes = [1, 32], strides = [1, 1]} : vector<1x96xf32> to vector<1x32xf32>
    %7 = vector.broadcast %6 : vector<1x32xf32> to vector<64x32xf32>
    %8 = arith.addf %5, %7 : vector<64x32xf32>
    %c0_6 = arith.constant 0 : index
    %c0_7 = arith.constant 0 : index
    %c0_8 = arith.constant 0 : index
    %9 = vector.load %arg2[%c0_6, %c0_7, %c0_8] : memref<8x8x32xf32, #tpu.memory_space<vmem>>, vector<8x8x32xf32>
    %10 = vector.shape_cast %9 : vector<8x8x32xf32> to vector<64x32xf32>
    %11 = vector.extract_strided_slice %0 {offsets = [0, 32], sizes = [32, 32], strides = [1, 1]} : vector<32x96xf32> to vector<32x32xf32>
    %cst_9 = arith.constant dense<0.000000e+00> : vector<64x32xf32>
    %12 = tpu.matmul %10, %11, %cst_9 {dimension_numbers = #tpu.dot_dimension_numbers<[1], [0], [0], [1], [0, 0, 1, 1], [], []>} : vector<64x32xf32>, vector<32x32xf32>, vector<64x32xf32> -> vector<64x32xf32>
    %13 = vector.extract_strided_slice %1 {offsets = [0, 32], sizes = [1, 32], strides = [1, 1]} : vector<1x96xf32> to vector<1x32xf32>
    %14 = vector.broadcast %13 : vector<1x32xf32> to vector<64x32xf32>
    %15 = arith.addf %12, %14 : vector<64x32xf32>
    %c0_10 = arith.constant 0 : index
    %c0_11 = arith.constant 0 : index
    %c0_12 = arith.constant 0 : index
    %16 = vector.load %arg3[%c0_10, %c0_11, %c0_12] : memref<8x8x32xf32, #tpu.memory_space<vmem>>, vector<8x8x32xf32>
    %17 = vector.shape_cast %16 : vector<8x8x32xf32> to vector<64x32xf32>
    %18 = vector.extract_strided_slice %0 {offsets = [0, 64], sizes = [32, 32], strides = [1, 1]} : vector<32x96xf32> to vector<32x32xf32>
    %cst_13 = arith.constant dense<0.000000e+00> : vector<64x32xf32>
    %19 = tpu.matmul %17, %18, %cst_13 {dimension_numbers = #tpu.dot_dimension_numbers<[1], [0], [0], [1], [0, 0, 1, 1], [], []>} : vector<64x32xf32>, vector<32x32xf32>, vector<64x32xf32> -> vector<64x32xf32>
    %20 = vector.extract_strided_slice %1 {offsets = [0, 64], sizes = [1, 32], strides = [1, 1]} : vector<1x96xf32> to vector<1x32xf32>
    %21 = vector.broadcast %20 : vector<1x32xf32> to vector<64x32xf32>
    %22 = arith.addf %19, %21 : vector<64x32xf32>
    %23 = vector.extract_strided_slice %8 {offsets = [0, 0], sizes = [64, 8], strides = [1, 1]} : vector<64x32xf32> to vector<64x8xf32>
    %24 = vector.shape_cast %23 : vector<64x8xf32> to vector<8x8x8xf32>
    %25 = vector.extract_strided_slice %8 {offsets = [0, 8], sizes = [64, 8], strides = [1, 1]} : vector<64x32xf32> to vector<64x8xf32>
    %26 = vector.shape_cast %25 : vector<64x8xf32> to vector<8x8x8xf32>
    %27 = vector.extract_strided_slice %8 {offsets = [0, 16], sizes = [64, 8], strides = [1, 1]} : vector<64x32xf32> to vector<64x8xf32>
    %28 = vector.shape_cast %27 : vector<64x8xf32> to vector<8x8x8xf32>
    %29 = vector.extract_strided_slice %8 {offsets = [0, 24], sizes = [64, 8], strides = [1, 1]} : vector<64x32xf32> to vector<64x8xf32>
    %30 = vector.shape_cast %29 : vector<64x8xf32> to vector<8x8x8xf32>
    %31 = tpu.concatenate %24, %26, %28, %30 in 0 : vector<8x8x8xf32>, vector<8x8x8xf32>, vector<8x8x8xf32>, vector<8x8x8xf32> -> vector<32x8x8xf32>
    %32 = vector.extract_strided_slice %15 {offsets = [0, 0], sizes = [64, 8], strides = [1, 1]} : vector<64x32xf32> to vector<64x8xf32>
    %33 = vector.shape_cast %32 : vector<64x8xf32> to vector<8x8x8xf32>
    %34 = vector.extract_strided_slice %15 {offsets = [0, 8], sizes = [64, 8], strides = [1, 1]} : vector<64x32xf32> to vector<64x8xf32>
    %35 = vector.shape_cast %34 : vector<64x8xf32> to vector<8x8x8xf32>
    %36 = vector.extract_strided_slice %15 {offsets = [0, 16], sizes = [64, 8], strides = [1, 1]} : vector<64x32xf32> to vector<64x8xf32>
    %37 = vector.shape_cast %36 : vector<64x8xf32> to vector<8x8x8xf32>
    %38 = vector.extract_strided_slice %15 {offsets = [0, 24], sizes = [64, 8], strides = [1, 1]} : vector<64x32xf32> to vector<64x8xf32>
    %39 = vector.shape_cast %38 : vector<64x8xf32> to vector<8x8x8xf32>
    %40 = tpu.concatenate %33, %35, %37, %39 in 0 : vector<8x8x8xf32>, vector<8x8x8xf32>, vector<8x8x8xf32>, vector<8x8x8xf32> -> vector<32x8x8xf32>
    %41 = vector.extract_strided_slice %22 {offsets = [0, 0], sizes = [64, 8], strides = [1, 1]} : vector<64x32xf32> to vector<64x8xf32>
    %42 = vector.shape_cast %41 : vector<64x8xf32> to vector<8x8x8xf32>
    %43 = vector.extract_strided_slice %22 {offsets = [0, 8], sizes = [64, 8], strides = [1, 1]} : vector<64x32xf32> to vector<64x8xf32>
    %44 = vector.shape_cast %43 : vector<64x8xf32> to vector<8x8x8xf32>
    %45 = vector.extract_strided_slice %22 {offsets = [0, 16], sizes = [64, 8], strides = [1, 1]} : vector<64x32xf32> to vector<64x8xf32>
    %46 = vector.shape_cast %45 : vector<64x8xf32> to vector<8x8x8xf32>
    %47 = vector.extract_strided_slice %22 {offsets = [0, 24], sizes = [64, 8], strides = [1, 1]} : vector<64x32xf32> to vector<64x8xf32>
    %48 = vector.shape_cast %47 : vector<64x8xf32> to vector<8x8x8xf32>
    %49 = tpu.concatenate %42, %44, %46, %48 in 0 : vector<8x8x8xf32>, vector<8x8x8xf32>, vector<8x8x8xf32>, vector<8x8x8xf32> -> vector<32x8x8xf32>
    "tpu.trace_start"() <{level = 10 : i32, message = "bqd,bkd->bqk"}> : () -> ()
    %cst_14 = arith.constant dense<0.000000e+00> : vector<32x8x8xf32>
    %50 = tpu.matmul %31, %40, %cst_14 {dimension_numbers = #tpu.dot_dimension_numbers<[2], [2], [1], [1], [0, 0, 0, 1, 1, 1], [0], [0]>} : vector<32x8x8xf32>, vector<32x8x8xf32>, vector<32x8x8xf32> -> vector<32x8x8xf32>
    "tpu.trace_stop"() : () -> ()
    %cst_15 = arith.constant dense<0xFF800000> : vector<32x8xf32>
    %51 = vector.multi_reduction <maximumf>, %50, %cst_15 [2] : vector<32x8x8xf32> to vector<32x8xf32>
    %52 = vector.shape_cast %51 : vector<32x8xf32> to vector<32x8x1xf32>
    %53 = vector.broadcast %52 : vector<32x8x1xf32> to vector<32x8x8xf32>
    %54 = arith.subf %50, %53 : vector<32x8x8xf32>
    %55 = math.exp %54 : vector<32x8x8xf32>
    %cst_16 = arith.constant dense<0.000000e+00> : vector<32x8xf32>
    %56 = vector.multi_reduction <add>, %55, %cst_16 [2] : vector<32x8x8xf32> to vector<32x8xf32>
    %57 = vector.shape_cast %56 : vector<32x8xf32> to vector<32x8x1xf32>
    %58 = vector.broadcast %57 : vector<32x8x1xf32> to vector<32x8x8xf32>
    %59 = arith.divf %55, %58 : vector<32x8x8xf32>
    "tpu.trace_start"() <{level = 10 : i32, message = "bqk,bkd->bqd"}> : () -> ()
    %cst_17 = arith.constant dense<0.000000e+00> : vector<32x8x8xf32>
    %60 = tpu.matmul %59, %49, %cst_17 {dimension_numbers = #tpu.dot_dimension_numbers<[2], [1], [1], [2], [0, 0, 0, 1, 1, 2], [0], [0]>} : vector<32x8x8xf32>, vector<32x8x8xf32>, vector<32x8x8xf32> -> vector<32x8x8xf32>
    "tpu.trace_stop"() : () -> ()
    %61 = vector.extract_strided_slice %60 {offsets = [0, 0, 0], sizes = [8, 8, 8], strides = [1, 1, 1]} : vector<32x8x8xf32> to vector<8x8x8xf32>
    %62 = vector.extract_strided_slice %60 {offsets = [8, 0, 0], sizes = [8, 8, 8], strides = [1, 1, 1]} : vector<32x8x8xf32> to vector<8x8x8xf32>
    %63 = vector.extract_strided_slice %60 {offsets = [16, 0, 0], sizes = [8, 8, 8], strides = [1, 1, 1]} : vector<32x8x8xf32> to vector<8x8x8xf32>
    %64 = vector.extract_strided_slice %60 {offsets = [24, 0, 0], sizes = [8, 8, 8], strides = [1, 1, 1]} : vector<32x8x8xf32> to vector<8x8x8xf32>
    %65 = tpu.concatenate %61, %62, %63, %64 in 2 : vector<8x8x8xf32>, vector<8x8x8xf32>, vector<8x8x8xf32>, vector<8x8x8xf32> -> vector<8x8x32xf32>
    %66 = vector.extract_strided_slice %59 {offsets = [0, 0, 0], sizes = [8, 8, 8], strides = [1, 1, 1]} : vector<32x8x8xf32> to vector<8x8x8xf32>
    %67 = vector.extract_strided_slice %59 {offsets = [8, 0, 0], sizes = [8, 8, 8], strides = [1, 1, 1]} : vector<32x8x8xf32> to vector<8x8x8xf32>
    %68 = vector.extract_strided_slice %59 {offsets = [16, 0, 0], sizes = [8, 8, 8], strides = [1, 1, 1]} : vector<32x8x8xf32> to vector<8x8x8xf32>
    %69 = vector.extract_strided_slice %59 {offsets = [24, 0, 0], sizes = [8, 8, 8], strides = [1, 1, 1]} : vector<32x8x8xf32> to vector<8x8x8xf32>
    %70 = tpu.concatenate %66, %67, %68, %69 in 2 : vector<8x8x8xf32>, vector<8x8x8xf32>, vector<8x8x8xf32>, vector<8x8x8xf32> -> vector<8x8x32xf32>
    %71 = vector.shape_cast %65 : vector<8x8x32xf32> to vector<8x256xf32>
    %c0_18 = arith.constant 0 : index
    %c0_19 = arith.constant 0 : index
    %72 = vector.load %arg6[%c0_18, %c0_19] : memref<8x256xf32, #tpu.memory_space<vmem>>, vector<8x256xf32>
    tpu.vector_store %arg6[%c0_18, %c0_19], %71 {strides = array<i32>} : memref<8x256xf32, #tpu.memory_space<vmem>>, vector<8x256xf32>,
    %73 = vector.shape_cast %70 : vector<8x8x32xf32> to vector<8x256xf32>
    %c0_20 = arith.constant 0 : index
    %c0_21 = arith.constant 0 : index
    %74 = vector.load %arg7[%c0_20, %c0_21] : memref<8x256xf32, #tpu.memory_space<vmem>>, vector<8x256xf32>
    tpu.vector_store %arg7[%c0_20, %c0_21], %73 {strides = array<i32>} : memref<8x256xf32, #tpu.memory_space<vmem>>, vector<8x256xf32>,
    return
  }
  func.func @transform_0(%arg0: i32) -> (i32, i32, i32) {
    %c0_i32 = arith.constant 0 : i32
    %c0_i32_0 = arith.constant 0 : i32
    %c0_i32_1 = arith.constant 0 : i32
    return %arg0, %c0_i32, %c0_i32_0 : i32, i32, i32
  }
  func.func @transform_1(%arg0: i32) -> (i32, i32, i32) {
    %c0_i32 = arith.constant 0 : i32
    %c0_i32_0 = arith.constant 0 : i32
    %c0_i32_1 = arith.constant 0 : i32
    return %arg0, %c0_i32, %c0_i32_0 : i32, i32, i32
  }
  func.func @transform_2(%arg0: i32) -> (i32, i32, i32) {
    %c0_i32 = arith.constant 0 : i32
    %c0_i32_0 = arith.constant 0 : i32
    %c0_i32_1 = arith.constant 0 : i32
    return %arg0, %c0_i32, %c0_i32_0 : i32, i32, i32
  }
  func.func @transform_3(%arg0: i32) -> (i32, i32) {
    %c0_i32 = arith.constant 0 : i32
    %c0_i32_0 = arith.constant 0 : i32
    %c0_i32_1 = arith.constant 0 : i32
    return %c0_i32, %c0_i32_0 : i32, i32
  }
  func.func @transform_4(%arg0: i32) -> (i32, i32) {
    %c0_i32 = arith.constant 0 : i32
    %c0_i32_0 = arith.constant 0 : i32
    %c0_i32_1 = arith.constant 0 : i32
    return %c0_i32, %c0_i32_0 : i32, i32
  }
  func.func @transform_5(%arg0: i32) -> (i32, i32) {
    %c0_i32 = arith.constant 0 : i32
    %c0_i32_0 = arith.constant 0 : i32
    return %arg0, %c0_i32 : i32, i32
  }
  func.func @transform_6(%arg0: i32) -> (i32, i32) {
    %c0_i32 = arith.constant 0 : i32
    %c0_i32_0 = arith.constant 0 : i32
    return %arg0, %c0_i32 : i32, i32
  }
}

</mosaic_0001>

<bundles_post_ra>
// kernel: tpu_custom_call.1
= control target key start
LH: loop header
LB: loop body
LE: loop exit
PB: predicated region body
PF: predicated region fallthrough
CT: control target
= control target key end

     0   :  { %12 = vsyncpa [#allocation3], 0  ;;  %s8753_s0 = inlined_call_operand.hbm [shape: f32[8,8,32], index: 0, kind: input, shape index: {}]   ;;  %s8754_s1 = inlined_call_operand.hbm [shape: f32[8,8,32], index: 1, kind: input, shape index: {}]   ;;  %s8755_s2 = inlined_call_operand.hbm [shape: f32[8,8,32], index: 2, kind: input, shape index: {}]   ;;  %s8756_s3 = inlined_call_operand.hbm [shape: f32[32,96], index: 3, kind: input, shape index: {}]   ;;  %s8757_s4 = inlined_call_operand.vmem [shape: f32[1,96], index: 4, kind: input, shape index: {}]   ;;  %s8758_s5 = inlined_call_operand.hbm [shape: f32[8,256], index: 5, kind: output, shape index: {0}]   ;;  %s8759_s6 = inlined_call_operand.hbm [shape: f32[8,256], index: 6, kind: output, shape index: {1}]  }
   0x1   :  { %13 = vsyncpa [#allocation6], 0 }
   0x2   :  { %14 = vsyncpa [#allocation9], 0 }
   0x3   :  { %15 = vsyncpa [#allocation4], 0 }
   0x4   :  { %16 = vsyncpa [#allocation12], 0  ;;  %s7371_s21 = smov [#allocation5]   ;;  %s7372_s23 = smov [#allocation2]  }
   0x5   :  { %s34_s22 = sshll.u32 %s7371_s21, 4  ;;  %s22_s24 = sshll.u32 %s7372_s23, 4  ;;  %s35_s22 = int_to_ptr.vmem [resolvable:$true] %s34_s22  ;;  %s7426_s24 = int_to_ptr.vmem [resolvable:$true] %s22_s24 }
   0x6   :  { %s7229_s27 = scalar_lea.hbm %s8754_s1, 1024 }
   0x7   :  { %p7230_p0 = scmp.ne.s32.totalorder %s8754_s1, %s7229_s27  ;;  %p7233_p1 = scmp.lt.u32.totalorder %s7229_s27, %s8754_s1 }
   0x9   :  { %p7235_p2 = pnand %p7233_p1, %p7230_p0 }
   0xb   :  { %7238 = shalt.err (!%p7235_p2)
}
   0xc   :  { %s7239_s8 = scalar_lea.vmem %s35_s22, 1024  ;;  %p7244_p4 = scmp.lt.s32.totalorder %s35_s22, %s35_s22 }
   0xd   :  { %p7240_p3 = scmp.ne.s32.totalorder %s35_s22, %s7239_s8  ;;  %p7245_p5 = scmp.lt.s32.totalorder %s7239_s8, %s7239_s8 }
   0xf   :  { %p7246_p6 = por %p7245_p5, %p7244_p4 }
  0x11   :  { %p7247_p7 = pnand %p7246_p6, %p7240_p3 }
  0x13   :  { %7250 = shalt.err (!%p7247_p7)
}
  0x14   :  { %s7373_s9 = smov 128   ;;  %s7374_s10 = smov 8  }
  0x15   :  { %40 = dma.hbm_to_vmem [thread:$0]  %s8754_s1, 1024, %s35_s22, [#allocation6], %s7373_s9, %s7373_s9, %s7374_s10  }
  0x16   :  { %s7251_s15 = scalar_lea.hbm %s8753_s0, 1024 }
  0x17   :  { %p7252_p8 = scmp.ne.s32.totalorder %s8753_s0, %s7251_s15  ;;  %p7255_p9 = scmp.lt.u32.totalorder %s7251_s15, %s8753_s0 }
  0x19   :  { %p7257_p10 = pnand %p7255_p9, %p7252_p8 }
  0x1b   :  { %7260 = shalt.err (!%p7257_p10)
}
  0x1c   :  { %s7261_s20 = scalar_lea.vmem %s7426_s24, 1024  ;;  %p7266_p12 = scmp.lt.s32.totalorder %s7426_s24, %s7426_s24 }
  0x1d   :  { %p7262_p11 = scmp.ne.s32.totalorder %s7426_s24, %s7261_s20  ;;  %p7267_p13 = scmp.lt.s32.totalorder %s7261_s20, %s7261_s20 }
  0x1f   :  { %p7268_p0 = por %p7267_p13, %p7266_p12 }
  0x21   :  { %p7269_p1 = pnand %p7268_p0, %p7262_p11 }
  0x23   :  { %7272 = shalt.err (!%p7269_p1)
}
  0x24   :  { %28 = dma.hbm_to_vmem [thread:$0]  %s8753_s0, 1024, %s7426_s24, [#allocation3], %s7373_s9, %s7373_s9, %s7374_s10  }
  0x25   :  { %s7375_s22 = smov [#allocation7]   ;;  %s7376_s25 = smov [#allocation8]  }
  0x26   :  { %s46_s23 = sshll.u32 %s7375_s22, 4  ;;  %s58_s26 = sshll.u32 %s7376_s25, 4  ;;  %s47_s23 = int_to_ptr.vmem [resolvable:$true] %s46_s23  ;;  %s7463_s26 = int_to_ptr.vmem [resolvable:$true] %s58_s26 }
  0x27   :  { %s7273_s29 = scalar_lea.hbm %s8755_s2, 1024 }
  0x28   :  { %p7274_p2 = scmp.ne.s32.totalorder %s8755_s2, %s7273_s29  ;;  %p7277_p3 = scmp.lt.u32.totalorder %s7273_s29, %s8755_s2 }
  0x2a   :  { %p7279_p4 = pnand %p7277_p3, %p7274_p2 }
  0x2c   :  { %7282 = shalt.err (!%p7279_p4)
}
  0x2d   :  { %s7283_s0 = scalar_lea.vmem %s47_s23, 1024  ;;  %p7288_p6 = scmp.lt.s32.totalorder %s47_s23, %s47_s23 }
  0x2e   :  { %p7284_p5 = scmp.ne.s32.totalorder %s47_s23, %s7283_s0  ;;  %p7289_p7 = scmp.lt.s32.totalorder %s7283_s0, %s7283_s0 }
  0x30   :  { %p7290_p8 = por %p7289_p7, %p7288_p6 }
  0x32   :  { %p7291_p9 = pnand %p7290_p8, %p7284_p5 }
  0x34   :  { %7294 = shalt.err (!%p7291_p9)
}
  0x35   :  { %52 = dma.hbm_to_vmem [thread:$0]  %s8755_s2, 1024, %s47_s23, [#allocation6], %s7373_s9, %s7373_s9, %s7374_s10  }
  0x36   :  { %s7295_s15 = scalar_lea.hbm %s8756_s3, 512 }
  0x37   :  { %p7296_p10 = scmp.ne.s32.totalorder %s8756_s3, %s7295_s15  ;;  %p7299_p11 = scmp.lt.u32.totalorder %s7295_s15, %s8756_s3 }
  0x39   :  { %p7301_p12 = pnand %p7299_p11, %p7296_p10 }
  0x3b   :  { %7304 = shalt.err (!%p7301_p12)
}
  0x3c   :  { %s7305_s20 = scalar_lea.vmem %s7463_s26, 512  ;;  %p7310_p0 = scmp.lt.s32.totalorder %s7463_s26, %s7463_s26 }
  0x3d   :  { %p7306_p13 = scmp.ne.s32.totalorder %s7463_s26, %s7305_s20  ;;  %p7311_p1 = scmp.lt.s32.totalorder %s7305_s20, %s7305_s20 }
  0x3f   :  { %p7312_p2 = por %p7311_p1, %p7310_p0 }
  0x41   :  { %p7313_p3 = pnand %p7312_p2, %p7306_p13 }
  0x43   :  { %7316 = shalt.err (!%p7313_p3)
}
  0x44   :  { %64 = dma.hbm_to_vmem [thread:$0]  %s8756_s3, 512, %s7463_s26, [#allocation9], %s7373_s9, %s7373_s9, %s7374_s10  }
  0x45   :  { %7361 = dma.done.wait [#allocation3], 1024  }
  0x46   :  { %7362 = vsyncadd [#allocation3], 4294966272 }
  0x47   :  { %7363 = dma.done.wait [#allocation6], 2048  }
  0x48   :  { %7364 = vsyncadd [#allocation6], 4294965248 }
  0x49   :  { %7365 = dma.done.wait [#allocation9], 512  }
  0x4a   :  { %7366 = vsyncadd [#allocation9], 4294966784  ;;  %vm98_vm0 = vcmask 261120   ;;  %v79_v0 = vld [vmem:[#allocation8] sm:$0xff]  ;;  %v80_v1 = vld [vmem:[#allocation8 + $0x8] sm:$0xff]  ;;  %s7377_s21 = smov 96  }
  0x4b   :  { %v81_v2 = vld [vmem:[#allocation8 + $0x10] sm:$0xff]  ;;  %v7081_v3 = vpack.i.bf16 %v80_v1, %v79_v0  ;;  %v82_v4 = vld [vmem:[#allocation8 + $0x18] sm:$0xff]  ;;  %v7037_v5 = vpack.c.bf16 %v80_v1, %v79_v0  ;;  %v84_v6 = vld [vmem:[#allocation2] sm:$0xff]  ;;  %s7378_s22 = smov 64   ;;  %v8760_v50 = vmov 0.0   ;;  %vm7380_vm1 = vmmov 0  }
  0x4c   :  { %v7041_v7 = vpack.c.bf16 %v82_v4, %v81_v2  ;;  %6665 = vmatprep.mubr.msk.f32.mxu0 %vm98_vm0, %v84_v6  ;;  %v7086_v8 = vpack.i.bf16 %v82_v4, %v81_v2  ;;  %v228_v9 = vld [vmem:[#allocation5] sm:$0xff]  ;;  %v85_v10 = vld [vmem:[#allocation2 + $0x8] sm:$0xff]  ;;  %v86_v11 = vld [vmem:[#allocation2 + $0x10] sm:$0xff]  ;;  %s7382_s23 = smov 112   ;;  %vm728_vm2 = vcmask 64512   ;;  %s7383_s25 = smov 104  }
  0x4d   :  { %7082 = vrot.lane.b32.xlu0 %v7081_v3, %s7377_s21  ;;  %7038 = vmatprep.subr.bf16.mxu0 %v7037_v5  ;;  %v87_v12 = vld [vmem:[#allocation2 + $0x18] sm:$0xff]  ;;  %v88_v13 = vld [vmem:[#allocation2 + $0x20] sm:$0xff]  ;;  %v89_v15 = vld [vmem:[#allocation2 + $0x28] sm:$0xff]  ;;  %s7384_s26 = smov 16   ;;  %s7385_s27 = smov 24   ;;  %vm5889_vm3 = vcmask 130048  }
  0x4e   :  { %7040 = vmatpush3.bf16.msra.mxu0 %v7037_v5  ;;  %6685 = vmatprep.mubr.msk.f32.mxu1 %vm98_vm0, %v228_v9  ;;  %v7509_v14 = vld [vmem:[%s8757_s4] ss:$0 sm:$0xff]  ;;  %v90_v16 = vld [vmem:[#allocation2 + $0x30] sm:$0xff]  ;;  %v91_v17 = vld [vmem:[#allocation2 + $0x38] sm:$0xff]  ;;  %s7381_s4 = smov 120   ;;  %vm5898_vm4 = vcmask 195584  }
  0x4f   :  { %7042 = vmatprep.subr.bf16.mxu0 %v7041_v7  ;;  %252 = vrot.lane.b32.xlu1 %v7509_v14, %s7377_s21  ;;  %v384_v18 = vld [vmem:[#allocation7] sm:$0xff]  ;;  %v229_v27 = vld [vmem:[#allocation5 + $0x8] sm:$0xff]  ;;  %v230_v28 = vld [vmem:[#allocation5 + $0x10] sm:$0xff]  ;;  %s7389_s28 = smov [#allocation10]   ;;  %vm6166_vm5 = vcmask 785408   ;;  %vm6164_vm6 = vcmask 523264  }
  0x50   :  { %v231_v31 = vld [vmem:[#allocation5 + $0x18] sm:$0xff]  ;;  %v232_v32 = vld [vmem:[#allocation5 + $0x20] sm:$0xff]  ;;  %v233_v38 = vld [vmem:[#allocation5 + $0x28] sm:$0xff]  ;;  %s6347_s29 = sshll.u32 %s7389_s28, 4  ;;  %s7390_s30 = smov [#allocation11]   ;;  %s6348_s29 = int_to_ptr.vmem [resolvable:$true] %s6347_s29 }
  0x51   :  { %7087 = vrot.lane.b32.xlu0 %v7086_v8, %s7377_s21  ;;  %v234_v39 = vld [vmem:[#allocation5 + $0x30] sm:$0xff]  ;;  %v235_v42 = vld [vmem:[#allocation5 + $0x38] sm:$0xff]  ;;  %v385_v43 = vld [vmem:[#allocation7 + $0x8] sm:$0xff]  ;;  %s6357_s7 = sshll.u32 %s7390_s30, 4  ;;  %s7317_s8 = scalar_lea.vmem %s6348_s29, 256  ;;  %s6358_s7 = int_to_ptr.vmem [resolvable:$true] %s6357_s7 }
  0x52   :  { %7044 = vmatpush3.bf16.msra.mxu0 %v7041_v7  ;;  %v386_v44 = vld [vmem:[#allocation7 + $0x10] sm:$0xff]  ;;  %v387_v45 = vld [vmem:[#allocation7 + $0x18] sm:$0xff]  ;;  %v388_v46 = vld [vmem:[#allocation7 + $0x20] sm:$0xff]  ;;  %p7318_p4 = scmp.ne.s32.totalorder %s6348_s29, %s7317_s8  ;;  %p7322_p5 = scmp.lt.s32.totalorder %s6348_s29, %s6348_s29 }
  0x53   :  { %7092 = vrot.lane.b32.xlu1 %v7081_v3, %s7378_s22  ;;  %v389_v47 = vld [vmem:[#allocation7 + $0x28] sm:$0xff]  ;;  %v390_v48 = vld [vmem:[#allocation7 + $0x30] sm:$0xff]  ;;  %v391_v49 = vld [vmem:[#allocation7 + $0x38] sm:$0xff]  ;;  %p7323_p6 = scmp.lt.s32.totalorder %s7317_s8, %s7317_s8 }
  0x55   :  { %6666 = vmatmul.mubr.msk.f32.vlgmr.msra.gmra.mrb[0].mxu0 %vm98_vm0, %v85_v10  ;;  %7097 = vrot.lane.b32.xlu0 %v7086_v8, %s7378_s22  ;;  %p7324_p7 = por %p7323_p6, %p7322_p5 }
  0x56   :  { %6668 = vmatprep.mubr.msk.f32.mxu0 %vm98_vm0, %v86_v11 }
  0x57   :  { %p7325_p8 = pnand %p7324_p7, %p7318_p4 }
  0x59   :  { %6669 = vmatmul.mubr.msk.f32.gmra.mrb[2].mxu0 %vm98_vm0, %v87_v12 }
  0x5a   :  { %6671 = vmatprep.mubr.msk.f32.mxu0 %vm98_vm0, %v88_v13 }
  0x5d   :  { %6672 = vmatmul.mubr.msk.f32.gmra.mrb[4].mxu0 %vm98_vm0, %v89_v15 }
  0x5e   :  { %6674 = vmatprep.mubr.msk.f32.mxu0 %vm98_vm0, %v90_v16 }
  0x61   :  { %6675 = vmatmul.mubr.msk.f32.gmra.mrb[6].mxu0 %vm98_vm0, %v91_v17 }
  0x62   :  { %6705 = vmatprep.mubr.msk.f32.mxu0 %vm98_vm0, %v384_v18 }
  0xbf   :  { %v7083_v19 = vpop.permute.xlu0 %7082 }
  0xc0   :  { %v7085_v20 = vunpack.i.h.bf16 %v7083_v19  ;;  %v7084_v21 = vunpack.i.l.bf16 %v7083_v19 }
  0xc1   :  { %v7521_v29 = vpop.permute.xlu1 %252 }
  0xc2   :  { %v7045_v22 = vpack.c.bf16 %v7085_v20, %v7084_v21 }
  0xc3   :  { %v7088_v23 = vpop.permute.xlu0 %7087 }
  0xc4   :  { %v7090_v24 = vunpack.i.h.bf16 %v7088_v23  ;;  %v7089_v25 = vunpack.i.l.bf16 %v7088_v23  ;;  %7046 = vmatprep.subr.bf16.mxu1 %v7045_v22 }
  0xc5   :  { %7048 = vmatpush3.bf16.msra.mxu1 %v7045_v22  ;;  %v7093_v35 = vpop.permute.xlu1 %7092 }
  0xc6   :  { %v7049_v26 = vpack.c.bf16 %v7090_v24, %v7089_v25  ;;  %v7095_v36 = vunpack.i.h.bf16 %v7093_v35  ;;  %v7094_v37 = vunpack.i.l.bf16 %v7093_v35 }
  0xc7   :  { %v7098_v30 = vpop.permute.xlu0 %7097 }
  0xc8   :  { %7050 = vmatprep.subr.bf16.mxu1 %v7049_v26  ;;  %v7100_v33 = vunpack.i.h.bf16 %v7098_v30  ;;  %v7099_v34 = vunpack.i.l.bf16 %v7098_v30  ;;  %v7053_v40 = vpack.c.bf16 %v7095_v36, %v7094_v37 }
  0xc9   :  { %7052 = vmatpush3.bf16.msra.mxu1 %v7049_v26 }
  0xca   :  { %v7057_v41 = vpack.c.bf16 %v7100_v33, %v7099_v34  ;;  %7054 = vmatprep.subr.bf16.mxu0 %v7053_v40  ;;  %6717 = vmatprep.subr.mxu1 %v8760_v50 }
  0xcb   :  { %7056 = vmatpush3.bf16.msra.mxu0 %v7053_v40 }
  0xcc   :  { %6686 = vmatmul.mubr.msk.f32.vlgmr.msra.gmra.mrb[0].mxu1 %vm98_vm0, %v229_v27  ;;  %7058 = vmatprep.subr.bf16.mxu0 %v7057_v41 }
  0xcd   :  { %6688 = vmatprep.mubr.msk.f32.mxu1 %vm98_vm0, %v230_v28 }
  0xcf   :  { %7060 = vmatpush3.bf16.msra.mxu0 %v7057_v41 }
  0xd0   :  { %6689 = vmatmul.mubr.msk.f32.gmra.mrb[2].mxu1 %vm98_vm0, %v231_v31  ;;  %6737 = vmatprep.subr.mxu0 %v8760_v50 }
  0xd1   :  { %6691 = vmatprep.mubr.msk.f32.mxu1 %vm98_vm0, %v232_v32 }
  0xd2   :  { %6706 = vmatmul.mubr.msk.f32.vlgmr.msra.gmra.mrb[8].mxu0 %vm98_vm0, %v385_v43 }
  0xd3   :  { %6708 = vmatprep.mubr.msk.f32.mxu0 %vm98_vm0, %v386_v44 }
  0xd4   :  { %6692 = vmatmul.mubr.msk.f32.gmra.mrb[4].mxu1 %vm98_vm0, %v233_v38 }
  0xd5   :  { %6694 = vmatprep.mubr.msk.f32.mxu1 %vm98_vm0, %v234_v39 }
  0xd6   :  { %6709 = vmatmul.mubr.msk.f32.gmra.mrb[10].mxu0 %vm98_vm0, %v387_v45 }
  0xd7   :  { %6711 = vmatprep.mubr.msk.f32.mxu0 %vm98_vm0, %v388_v46 }
  0xd8   :  { %6695 = vmatmul.mubr.msk.f32.gmra.mrb[6].mxu1 %vm98_vm0, %v235_v42 }
  0xd9   :  { %6719 = vmatprep.mubr.msk.f32.mxu1 %vm7380_vm1, %v8760_v50 }
  0xda   :  { %6712 = vmatmul.mubr.msk.f32.gmra.mrb[12].mxu0 %vm98_vm0, %v389_v47 }
  0xdb   :  { %6714 = vmatprep.mubr.msk.f32.mxu0 %vm98_vm0, %v390_v48 }
  0xde   :  { %6715 = vmatmul.mubr.msk.f32.gmra.mrb[14].mxu0 %vm98_vm0, %v391_v49 }
  0xdf   :  { %6739 = vmatprep.mubr.msk.f32.mxu0 %vm7380_vm1, %v8760_v50 }
 0x128   :  { %v6667_v51 = vpop.f32.mrb[0].mxu0 }
 0x129   :  { %v7544_v52 = vadd.f32 %v6667_v51, %v7509_v14  ;;  %v189_v53 = vpop.f32.mrb[1].mxu0 }
 0x12a   :  { %v7547_v54 = vadd.f32 %v7509_v14, %v189_v53 }
 0x12b   :  { %546 = vrot.lane.b32.xlu0 %v7544_v52, %s7381_s4 }
 0x12c   :  { %544 = vrot.lane.b32.xlu1 %v7547_v54, %s7381_s4  ;;  %v6670_v55 = vpop.f32.mrb[2].mxu0 }
 0x12d   :  { %v199_v56 = vpop.f32.mrb[3].mxu0  ;;  %v7556_v57 = vadd.f32 %v6670_v55, %v7509_v14 }
 0x12e   :  { %v7561_v58 = vadd.f32 %v7509_v14, %v199_v56 }
 0x12f   :  { %562 = vrot.lane.b32.xlu0 %v7544_v52, %s7382_s23 }
 0x130   :  { %560 = vrot.lane.b32.xlu1 %v7547_v54, %s7382_s23  ;;  %v6673_v59 = vpop.f32.mrb[4].mxu0 }
 0x131   :  { %v209_v60 = vpop.f32.mrb[5].mxu0  ;;  %v7570_v63 = vadd.f32 %v6673_v59, %v7509_v14 }
 0x132   :  { %v7575_v0 = vadd.f32 %v7509_v14, %v209_v60 }
 0x133   :  { %550 = vrot.lane.b32.xlu0 %v7556_v57, %s7381_s4 }
 0x134   :  { %548 = vrot.lane.b32.xlu1 %v7561_v58, %s7381_s4  ;;  %v6676_v61 = vpop.f32.mrb[6].mxu0 }
 0x135   :  { %v219_v62 = vpop.f32.mrb[7].mxu0  ;;  %v7584_v1 = vadd.f32 %v6676_v61, %v7509_v14 }
 0x136   :  { %v7589_v2 = vadd.f32 %v7509_v14, %v219_v62 }
 0x137   :  { %566 = vrot.lane.b32.xlu0 %v7556_v57, %s7382_s23 }
 0x138   :  { %564 = vrot.lane.b32.xlu1 %v7561_v58, %s7382_s23 }
 0x13b   :  { %554 = vrot.lane.b32.xlu0 %v7570_v63, %s7381_s4 }
 0x13c   :  { %552 = vrot.lane.b32.xlu1 %v7575_v0, %s7381_s4 }
 0x13f   :  { %570 = vrot.lane.b32.xlu0 %v7570_v63, %s7382_s23 }
 0x140   :  { %568 = vrot.lane.b32.xlu1 %v7575_v0, %s7382_s23 }
 0x143   :  { %558 = vrot.lane.b32.xlu0 %v7584_v1, %s7381_s4 }
 0x144   :  { %556 = vrot.lane.b32.xlu1 %v7589_v2, %s7381_s4 }
 0x147   :  { %574 = vrot.lane.b32.xlu0 %v7584_v1, %s7382_s23 }
 0x148   :  { %572 = vrot.lane.b32.xlu1 %v7589_v2, %s7382_s23 }
 0x19d   :  { %v547_v28 = vpop.permute.xlu0 %546 }
 0x19f   :  { %v6687_v3 = vpop.f32.mrb[0].mxu1 }
 0x1a0   :  { %v7600_v4 = vadd.f32 %v6687_v3, %v7521_v29  ;;  %v345_v5 = vpop.f32.mrb[1].mxu1 }
 0x1a1   :  { %v346_v6 = vadd.f32 %v345_v5, %v7521_v29  ;;  %v7719_v30 = vpop.permute.xlu0 %562 }
 0x1a2   :  { %602 = vrot.lane.b32.xlu0 %v7600_v4, %s7381_s4 }
 0x1a3   :  { %v6690_v7 = vpop.f32.mrb[2].mxu1  ;;  %6718 = vmatpush3.xpose.msk.msra.mxu1 %vm728_vm2, %v346_v6  ;;  %600 = vrot.lane.b32.xlu1 %v346_v6, %s7381_s4 }
 0x1a4   :  { %v355_v8 = vpop.f32.mrb[3].mxu1  ;;  %6722 = vmatprep.subr.mxu1 %v8760_v50  ;;  %v361_v10 = vadd.f32 %v6690_v7, %v7521_v29 }
 0x1a5   :  { %v356_v12 = vadd.f32 %v355_v8, %v7521_v29  ;;  %v7685_v20 = vpop.f32.mrb[8].mxu0  ;;  %v551_v32 = vpop.permute.xlu0 %550 }
 0x1a6   :  { %618 = vrot.lane.b32.xlu0 %v7600_v4, %s7382_s23  ;;  %6720 = vmatmul.mubr.msk.f32.vlgmr.msra.gmra.mrb[8].mxu1 %vm728_vm2, %v7547_v54  ;;  %v7689_v21 = vpop.f32.mrb[9].mxu0 }
 0x1a7   :  { %v6693_v9 = vpop.f32.mrb[4].mxu1  ;;  %616 = vrot.lane.b32.xlu1 %v346_v6, %s7382_s23  ;;  %6723 = vmatpush3.xpose.msk.msra.mxu1 %vm728_vm2, %v7600_v4 }
 0x1a8   :  { %v365_v11 = vpop.f32.mrb[5].mxu1  ;;  %6724 = vmatprep.mubr.msk.f32.mxu1 %vm7380_vm1, %v8760_v50  ;;  %6727 = vmatprep.subr.mxu1 %v8760_v50  ;;  %v371_v18 = vadd.f32 %v6693_v9, %v7521_v29 }
 0x1a9   :  { %v366_v13 = vadd.f32 %v365_v11, %v7521_v29  ;;  %v7691_v22 = vpop.f32.mrb[10].mxu0  ;;  %v7723_v34 = vpop.permute.xlu0 %566 }
 0x1aa   :  { %606 = vrot.lane.b32.xlu0 %v361_v10, %s7381_s4  ;;  %6725 = vmatmul.mubr.msk.f32.vlgmr.msra.gmra.mrb[10].mxu1 %vm728_vm2, %v7544_v52  ;;  %v7695_v23 = vpop.f32.mrb[11].mxu0 }
 0x1ab   :  { %v6696_v15 = vpop.f32.mrb[6].mxu1  ;;  %6738 = vmatpush3.xpose.msk.msra.mxu0 %vm728_vm2, %v366_v13  ;;  %604 = vrot.lane.b32.xlu1 %v356_v12, %s7381_s4 }
 0x1ac   :  { %6728 = vmatpush3.xpose.msk.msra.mxu1 %vm728_vm2, %v356_v12  ;;  %v375_v16 = vpop.f32.mrb[7].mxu1  ;;  %6729 = vmatprep.mubr.msk.f32.mxu1 %vm7380_vm1, %v8760_v50  ;;  %v381_v19 = vadd.f32 %v6696_v15, %v7521_v29 }
 0x1ad   :  { %v376_v17 = vadd.f32 %v375_v16, %v7521_v29  ;;  %6747 = vmatprep.subr.mxu0 %v8760_v50  ;;  %6732 = vmatprep.subr.mxu1 %v8760_v50  ;;  %v7697_v24 = vpop.f32.mrb[12].mxu0  ;;  %v545_v29 = vpop.permute.xlu1 %544 }
 0x1ae   :  { %622 = vrot.lane.b32.xlu0 %v361_v10, %s7382_s23  ;;  %6740 = vmatmul.mubr.msk.f32.vlgmr.msra.gmra.mrb[16].mxu0 %vm728_vm2, %v7575_v0  ;;  %v7700_v25 = vpop.f32.mrb[13].mxu0  ;;  %v555_v36 = vpop.permute.xlu0 %554 }
 0x1af   :  { %6730 = vmatmul.mubr.msk.f32.vlgmr.msra.gmra.mrb[12].mxu1 %vm728_vm2, %v7561_v58  ;;  %6748 = vmatpush3.xpose.msk.msra.mxu0 %vm728_vm2, %v376_v17 }
 0x1b0   :  { %620 = vrot.lane.b32.xlu1 %v356_v12, %s7382_s23  ;;  %6733 = vmatpush3.xpose.msk.msra.mxu1 %vm728_vm2, %v361_v10 }
 0x1b1   :  { %6734 = vmatprep.mubr.msk.f32.mxu1 %vm7380_vm1, %v8760_v50  ;;  %6749 = vmatprep.mubr.msk.f32.mxu0 %vm7380_vm1, %v8760_v50  ;;  %v7702_v26 = vpop.f32.mrb[14].mxu0  ;;  %v7721_v31 = vpop.permute.xlu1 %560 }
 0x1b2   :  { %610 = vrot.lane.b32.xlu0 %v371_v18, %s7381_s4  ;;  %6742 = vmatprep.subr.mxu1 %v8760_v50  ;;  %v7705_v27 = vpop.f32.mrb[15].mxu0  ;;  %v7727_v38 = vpop.permute.xlu0 %570 }
 0x1b3   :  { %6735 = vmatmul.mubr.msk.f32.vlgmr.msra.gmra.mrb[14].mxu1 %vm728_vm2, %v7556_v57  ;;  %6750 = vmatmul.mubr.msk.f32.vlgmr.msra.gmra.mrb[18].mxu0 %vm728_vm2, %v7589_v2 }
 0x1b4   :  { %608 = vrot.lane.b32.xlu1 %v366_v13, %s7381_s4  ;;  %6743 = vmatpush3.xpose.msk.msra.mxu1 %vm728_vm2, %v371_v18 }
 0x1b5   :  { %6744 = vmatprep.mubr.msk.f32.mxu1 %vm7380_vm1, %v8760_v50  ;;  %6752 = vmatprep.subr.mxu1 %v8760_v50  ;;  %v549_v33 = vpop.permute.xlu1 %548 }
 0x1b6   :  { %626 = vrot.lane.b32.xlu0 %v371_v18, %s7382_s23  ;;  %6757 = vmatprep.subr.mxu0 %v8760_v50  ;;  %v559_v40 = vpop.permute.xlu0 %558 }
 0x1b7   :  { %6745 = vmatmul.mubr.msk.f32.vlgmr.msra.gmra.mrb[16].mxu1 %vm728_vm2, %v7570_v63  ;;  %6759 = vmatprep.mubr.msk.f32.mxu0 %vm7380_vm1, %v8760_v50 }
 0x1b8   :  { %624 = vrot.lane.b32.xlu1 %v366_v13, %s7382_s23  ;;  %6753 = vmatpush3.xpose.msk.msra.mxu1 %vm728_vm2, %v381_v19 }
 0x1b9   :  { %6754 = vmatprep.mubr.msk.f32.mxu1 %vm7380_vm1, %v8760_v50  ;;  %6762 = vmatprep.subr.mxu1 %v8760_v50  ;;  %v7725_v35 = vpop.permute.xlu1 %564 }
 0x1ba   :  { %614 = vrot.lane.b32.xlu0 %v381_v19, %s7381_s4  ;;  %v7731_v41 = vpop.permute.xlu0 %574 }
 0x1bb   :  { %6755 = vmatmul.mubr.msk.f32.vlgmr.msra.gmra.mrb[18].mxu1 %vm728_vm2, %v7584_v1 }
 0x1bc   :  { %612 = vrot.lane.b32.xlu1 %v376_v17, %s7381_s4  ;;  %6764 = vmatprep.mubr.msk.f32.mxu1 %vm7380_vm1, %v8760_v50 }
 0x1bd   :  { %v553_v37 = vpop.permute.xlu1 %552 }
 0x1be   :  { %630 = vrot.lane.b32.xlu0 %v381_v19, %s7382_s23 }
 0x1c0   :  { %632 = vrot.lane.b32.xlu1 %v346_v6, %s7383_s25 }
 0x1c1   :  { %v7729_v39 = vpop.permute.xlu1 %568 }
 0x1c2   :  { %634 = vrot.lane.b32.xlu0 %v7600_v4, %s7383_s25 }
 0x1c4   :  { %576 = vrot.lane.b32.xlu1 %v7547_v54, %s7383_s25 }
 0x1c6   :  { %578 = vrot.lane.b32.xlu0 %v7544_v52, %s7383_s25 }
 0x1c8   :  { %636 = vrot.lane.b32.xlu1 %v356_v12, %s7383_s25 }
 0x1ca   :  { %638 = vrot.lane.b32.xlu0 %v361_v10, %s7383_s25 }
 0x1cc   :  { %628 = vrot.lane.b32.xlu1 %v376_v17, %s7382_s23 }
 0x1ce   :  { %582 = vrot.lane.b32.xlu0 %v7556_v57, %s7383_s25 }
 0x1d0   :  { %580 = vrot.lane.b32.xlu1 %v7561_v58, %s7383_s25 }
 0x1d2   :  { %642 = vrot.lane.b32.xlu0 %v371_v18, %s7383_s25 }
 0x1d4   :  { %640 = vrot.lane.b32.xlu1 %v366_v13, %s7383_s25 }
 0x1d6   :  { %586 = vrot.lane.b32.xlu0 %v7570_v63, %s7383_s25 }
 0x1d8   :  { %584 = vrot.lane.b32.xlu1 %v7575_v0, %s7383_s25 }
 0x1da   :  { %646 = vrot.lane.b32.xlu0 %v381_v19, %s7383_s25 }
 0x1dc   :  { %644 = vrot.lane.b32.xlu1 %v376_v17, %s7383_s25 }
 0x1de   :  { %590 = vrot.lane.b32.xlu0 %v7584_v1, %s7383_s25 }
 0x1e0   :  { %588 = vrot.lane.b32.xlu1 %v7589_v2, %s7383_s25 }
 0x1e2   :  { %404 = vrot.lane.b32.xlu0 %v7509_v14, %s7378_s22  ;;  %v557_v14 = vpop.permute.xlu1 %556 }
 0x1e6   :  { %v7733_v42 = vpop.permute.xlu1 %572 }
 0x214   :  { %v603_v43 = vpop.permute.xlu0 %602 }
 0x215   :  { %v601_v44 = vpop.permute.xlu1 %600  ;;  %6763 = vmatpush3.xpose.msk.msra.mxu1 %vm728_vm2, %v603_v43 }
 0x216   :  { %6758 = vmatpush3.xpose.msk.msra.mxu0 %vm728_vm2, %v601_v44  ;;  %6772 = vmatprep.subr.mxu1 %v8760_v50 }
 0x217   :  { %6767 = vmatprep.subr.mxu0 %v8760_v50 }
 0x218   :  { %v619_v45 = vpop.permute.xlu0 %618  ;;  %6765 = vmatmul.mubr.msk.f32.vlgmr.msra.gmra.mrb[20].mxu1 %vm728_vm2, %v547_v28 }
 0x219   :  { %6760 = vmatmul.mubr.msk.f32.vlgmr.msra.gmra.mrb[20].mxu0 %vm728_vm2, %v545_v29  ;;  %v617_v46 = vpop.permute.xlu1 %616  ;;  %6774 = vmatprep.mubr.msk.f32.mxu1 %vm7380_vm1, %v8760_v50 }
 0x21a   :  { %6769 = vmatprep.mubr.msk.f32.mxu0 %vm7380_vm1, %v8760_v50 }
 0x21c   :  { %v607_v47 = vpop.permute.xlu0 %606 }
 0x21d   :  { %v605_v48 = vpop.permute.xlu1 %604  ;;  %6773 = vmatpush3.xpose.msk.msra.mxu1 %vm728_vm2, %v607_v47 }
 0x21e   :  { %6768 = vmatpush3.xpose.msk.msra.mxu0 %vm728_vm2, %v605_v48  ;;  %6782 = vmatprep.subr.mxu1 %v8760_v50 }
 0x21f   :  { %6777 = vmatprep.subr.mxu0 %v8760_v50 }
 0x220   :  { %v623_v49 = vpop.permute.xlu0 %622  ;;  %6775 = vmatmul.mubr.msk.f32.vlgmr.msra.gmra.mrb[22].mxu1 %vm728_vm2, %v551_v32 }
 0x221   :  { %6770 = vmatmul.mubr.msk.f32.vlgmr.msra.gmra.mrb[22].mxu0 %vm728_vm2, %v549_v33  ;;  %6784 = vmatprep.mubr.msk.f32.mxu1 %vm7380_vm1, %v8760_v50 }
 0x222   :  { %v621_v51 = vpop.permute.xlu1 %620  ;;  %6779 = vmatprep.mubr.msk.f32.mxu0 %vm7380_vm1, %v8760_v50 }
 0x224   :  { %v611_v52 = vpop.permute.xlu0 %610 }
 0x225   :  { %6783 = vmatpush3.xpose.msk.msra.mxu1 %vm728_vm2, %v611_v52 }
 0x226   :  { %v609_v53 = vpop.permute.xlu1 %608  ;;  %6792 = vmatprep.subr.mxu1 %v8760_v50 }
 0x227   :  { %6778 = vmatpush3.xpose.msk.msra.mxu0 %vm728_vm2, %v609_v53 }
 0x228   :  { %v627_v54 = vpop.permute.xlu0 %626  ;;  %6785 = vmatmul.mubr.msk.f32.vlgmr.msra.gmra.mrb[24].mxu1 %vm728_vm2, %v555_v36  ;;  %6787 = vmatprep.subr.mxu0 %v8760_v50 }
 0x229   :  { %6794 = vmatprep.mubr.msk.f32.mxu1 %vm7380_vm1, %v8760_v50 }
 0x22a   :  { %6780 = vmatmul.mubr.msk.f32.vlgmr.msra.gmra.mrb[24].mxu0 %vm728_vm2, %v553_v37  ;;  %v625_v55 = vpop.permute.xlu1 %624 }
 0x22b   :  { %6789 = vmatprep.mubr.msk.f32.mxu0 %vm7380_vm1, %v8760_v50 }
 0x22c   :  { %v615_v56 = vpop.permute.xlu0 %614 }
 0x22d   :  { %6793 = vmatpush3.xpose.msk.msra.mxu1 %vm728_vm2, %v615_v56 }
 0x22e   :  { %v613_v57 = vpop.permute.xlu1 %612  ;;  %6802 = vmatprep.subr.mxu1 %v8760_v50 }
 0x22f   :  { %6788 = vmatpush3.xpose.msk.msra.mxu0 %vm728_vm2, %v613_v57 }
 0x230   :  { %v631_v58 = vpop.permute.xlu0 %630  ;;  %6795 = vmatmul.mubr.msk.f32.vlgmr.msra.gmra.mrb[26].mxu1 %vm728_vm2, %v559_v40  ;;  %6797 = vmatprep.subr.mxu0 %v8760_v50 }
 0x231   :  { %6803 = vmatpush3.xpose.msk.msra.mxu1 %vm728_vm2, %v619_v45  ;;  %6804 = vmatprep.mubr.msk.f32.mxu1 %vm7380_vm1, %v8760_v50 }
 0x232   :  { %6790 = vmatmul.mubr.msk.f32.vlgmr.msra.gmra.mrb[26].mxu0 %vm728_vm2, %v557_v14  ;;  %v633_v59 = vpop.permute.xlu1 %632  ;;  %6812 = vmatprep.subr.mxu1 %v8760_v50 }
 0x233   :  { %6798 = vmatpush3.xpose.msk.msra.mxu0 %vm728_vm2, %v617_v46  ;;  %6799 = vmatprep.mubr.msk.f32.mxu0 %vm7380_vm1, %v8760_v50 }
 0x234   :  { %v635_v60 = vpop.permute.xlu0 %634  ;;  %6805 = vmatmul.mubr.msk.f32.vlgmr.msra.gmra.mrb[28].mxu1 %vm728_vm2, %v7719_v30  ;;  %6807 = vmatprep.subr.mxu0 %v8760_v50 }
 0x235   :  { %6813 = vmatpush3.xpose.msk.msra.mxu1 %vm728_vm2, %v623_v49  ;;  %6814 = vmatprep.mubr.msk.f32.mxu1 %vm7380_vm1, %v8760_v50 }
 0x236   :  { %6800 = vmatmul.mubr.msk.f32.vlgmr.msra.gmra.mrb[28].mxu0 %vm728_vm2, %v7721_v31  ;;  %v577_v61 = vpop.permute.xlu1 %576  ;;  %6822 = vmatprep.subr.mxu1 %v8760_v50 }
 0x237   :  { %6808 = vmatpush3.xpose.msk.msra.mxu0 %vm728_vm2, %v621_v51  ;;  %6809 = vmatprep.mubr.msk.f32.mxu0 %vm7380_vm1, %v8760_v50 }
 0x238   :  { %v579_v62 = vpop.permute.xlu0 %578  ;;  %6815 = vmatmul.mubr.msk.f32.vlgmr.msra.gmra.mrb[30].mxu1 %vm728_vm2, %v7723_v34  ;;  %6817 = vmatprep.subr.mxu0 %v8760_v50 }
 0x239   :  { %6823 = vmatpush3.xpose.msk.msra.mxu1 %vm728_vm2, %v627_v54  ;;  %6824 = vmatprep.mubr.msk.f32.mxu1 %vm7380_vm1, %v8760_v50 }
 0x23a   :  { %6810 = vmatmul.mubr.msk.f32.vlgmr.msra.gmra.mrb[30].mxu0 %vm728_vm2, %v7725_v35  ;;  %v637_v63 = vpop.permute.xlu1 %636  ;;  %6832 = vmatprep.subr.mxu1 %v8760_v50 }
 0x23b   :  { %6818 = vmatpush3.xpose.msk.msra.mxu0 %vm728_vm2, %v625_v55  ;;  %6819 = vmatprep.mubr.msk.f32.mxu0 %vm7380_vm1, %v8760_v50 }
 0x23c   :  { %v639_v0 = vpop.permute.xlu0 %638  ;;  %6825 = vmatmul.mubr.msk.f32.vlgmr.msra.gmra.mrb[32].mxu1 %vm728_vm2, %v7727_v38  ;;  %6827 = vmatprep.subr.mxu0 %v8760_v50 }
 0x23d   :  { %6833 = vmatpush3.xpose.msk.msra.mxu1 %vm728_vm2, %v631_v58  ;;  %6834 = vmatprep.mubr.msk.f32.mxu1 %vm7380_vm1, %v8760_v50 }
 0x23e   :  { %6820 = vmatmul.mubr.msk.f32.vlgmr.msra.gmra.mrb[32].mxu0 %vm728_vm2, %v7729_v39  ;;  %v629_v1 = vpop.permute.xlu1 %628  ;;  %6842 = vmatprep.subr.mxu1 %v8760_v50 }
 0x23f   :  { %6828 = vmatpush3.xpose.msk.msra.mxu0 %vm728_vm2, %v629_v1  ;;  %6829 = vmatprep.mubr.msk.f32.mxu0 %vm7380_vm1, %v8760_v50 }
 0x240   :  { %v583_v2 = vpop.permute.xlu0 %582  ;;  %6835 = vmatmul.mubr.msk.f32.vlgmr.msra.gmra.mrb[34].mxu1 %vm728_vm2, %v7731_v41  ;;  %6837 = vmatprep.subr.mxu0 %v8760_v50 }
 0x241   :  { %6843 = vmatpush3.xpose.msk.msra.mxu1 %vm728_vm2, %v635_v60  ;;  %6844 = vmatprep.mubr.msk.f32.mxu1 %vm7380_vm1, %v8760_v50 }
 0x242   :  { %6830 = vmatmul.mubr.msk.f32.vlgmr.msra.gmra.mrb[34].mxu0 %vm728_vm2, %v7733_v42  ;;  %v581_v3 = vpop.permute.xlu1 %580  ;;  %6852 = vmatprep.subr.mxu1 %v8760_v50 }
 0x243   :  { %6838 = vmatpush3.xpose.msk.msra.mxu0 %vm728_vm2, %v633_v59  ;;  %6839 = vmatprep.mubr.msk.f32.mxu0 %vm7380_vm1, %v8760_v50 }
 0x244   :  { %v643_v4 = vpop.permute.xlu0 %642  ;;  %6845 = vmatmul.mubr.msk.f32.vlgmr.msra.gmra.mrb[36].mxu1 %vm728_vm2, %v579_v62  ;;  %6847 = vmatprep.subr.mxu0 %v8760_v50 }
 0x245   :  { %6853 = vmatpush3.xpose.msk.msra.mxu1 %vm728_vm2, %v639_v0  ;;  %6854 = vmatprep.mubr.msk.f32.mxu1 %vm7380_vm1, %v8760_v50 }
 0x246   :  { %6840 = vmatmul.mubr.msk.f32.vlgmr.msra.gmra.mrb[36].mxu0 %vm728_vm2, %v577_v61  ;;  %v641_v5 = vpop.permute.xlu1 %640  ;;  %6862 = vmatprep.subr.mxu1 %v8760_v50 }
 0x247   :  { %6848 = vmatpush3.xpose.msk.msra.mxu0 %vm728_vm2, %v637_v63  ;;  %6849 = vmatprep.mubr.msk.f32.mxu0 %vm7380_vm1, %v8760_v50 }
 0x248   :  { %v587_v6 = vpop.permute.xlu0 %586  ;;  %6855 = vmatmul.mubr.msk.f32.vlgmr.msra.gmra.mrb[38].mxu1 %vm728_vm2, %v583_v2  ;;  %6857 = vmatprep.subr.mxu0 %v8760_v50 }
 0x249   :  { %6863 = vmatpush3.xpose.msk.msra.mxu1 %vm728_vm2, %v643_v4  ;;  %6864 = vmatprep.mubr.msk.f32.mxu1 %vm7380_vm1, %v8760_v50 }
 0x24a   :  { %6850 = vmatmul.mubr.msk.f32.vlgmr.msra.gmra.mrb[38].mxu0 %vm728_vm2, %v581_v3  ;;  %v585_v7 = vpop.permute.xlu1 %584  ;;  %6872 = vmatprep.subr.mxu1 %v8760_v50 }
 0x24b   :  { %6858 = vmatpush3.xpose.msk.msra.mxu0 %vm728_vm2, %v641_v5  ;;  %6859 = vmatprep.mubr.msk.f32.mxu0 %vm7380_vm1, %v8760_v50 }
 0x24c   :  { %v647_v8 = vpop.permute.xlu0 %646  ;;  %6865 = vmatmul.mubr.msk.f32.vlgmr.msra.gmra.mrb[40].mxu1 %vm728_vm2, %v587_v6  ;;  %6867 = vmatprep.subr.mxu0 %v8760_v50 }
 0x24d   :  { %6873 = vmatpush3.xpose.msk.msra.mxu1 %vm728_vm2, %v647_v8  ;;  %6874 = vmatprep.mubr.msk.f32.mxu1 %vm7380_vm1, %v8760_v50 }
 0x24e   :  { %6860 = vmatmul.mubr.msk.f32.vlgmr.msra.gmra.mrb[40].mxu0 %vm728_vm2, %v585_v7  ;;  %v645_v9 = vpop.permute.xlu1 %644  ;;  %6882 = vmatprep.subr.mxu1 %v8760_v50 }
 0x24f   :  { %6868 = vmatpush3.xpose.msk.msra.mxu0 %vm728_vm2, %v645_v9  ;;  %6869 = vmatprep.mubr.msk.f32.mxu0 %vm7380_vm1, %v8760_v50 }
 0x250   :  { %v591_v10 = vpop.permute.xlu0 %590  ;;  %6877 = vmatprep.subr.mxu0 %v8760_v50 }
 0x251   :  { %6875 = vmatmul.mubr.msk.f32.vlgmr.msra.gmra.mrb[42].mxu1 %vm728_vm2, %v591_v10 }
 0x252   :  { %v589_v11 = vpop.permute.xlu1 %588  ;;  %6884 = vmatprep.mubr.msk.f32.mxu1 %vm7380_vm1, %v8760_v50 }
 0x253   :  { %6870 = vmatmul.mubr.msk.f32.vlgmr.msra.gmra.mrb[42].mxu0 %vm728_vm2, %v589_v11 }
 0x254   :  { %v405_v12 = vpop.permute.xlu0 %404  ;;  %6879 = vmatprep.mubr.msk.f32.mxu0 %vm7380_vm1, %v8760_v50 }
 0x255   :  { %v498_v13 = vadd.f32 %v7689_v21, %v405_v12  ;;  %v503_v15 = vadd.f32 %v7685_v20, %v405_v12  ;;  %v7868_v16 = vadd.f32 %v7695_v23, %v405_v12  ;;  %v7871_v17 = vadd.f32 %v7691_v22, %v405_v12 }
 0x256   :  { %v7880_v18 = vadd.f32 %v7700_v25, %v405_v12  ;;  %v7883_v19 = vadd.f32 %v7697_v24, %v405_v12  ;;  %v7890_v20 = vadd.f32 %v7702_v26, %v405_v12  ;;  %v7906_v21 = vadd.f32 %v7705_v27, %v405_v12 }
 0x257   :  { %656 = vrot.lane.b32.xlu0 %v498_v13, %s7381_s4  ;;  %658 = vrot.lane.b32.xlu1 %v503_v15, %s7381_s4 }
 0x258   :  { %6878 = vmatpush3.msra.mxu0 %v498_v13  ;;  %6883 = vmatpush3.msra.mxu1 %v503_v15 }
 0x259   :  { %6887 = vmatprep.subr.mxu0 %v8760_v50  ;;  %6892 = vmatprep.subr.mxu1 %v8760_v50 }
 0x25b   :  { %660 = vrot.lane.b32.xlu0 %v7868_v16, %s7381_s4  ;;  %662 = vrot.lane.b32.xlu1 %v7871_v17, %s7381_s4 }
 0x25f   :  { %664 = vrot.lane.b32.xlu0 %v7880_v18, %s7381_s4  ;;  %666 = vrot.lane.b32.xlu1 %v7883_v19, %s7381_s4 }
 0x263   :  { %680 = vrot.lane.b32.xlu0 %v498_v13, %s7382_s23  ;;  %670 = vrot.lane.b32.xlu1 %v7890_v20, %s7381_s4 }
 0x267   :  { %684 = vrot.lane.b32.xlu0 %v7868_v16, %s7382_s23  ;;  %682 = vrot.lane.b32.xlu1 %v503_v15, %s7382_s23 }
 0x26b   :  { %704 = vrot.lane.b32.xlu0 %v498_v13, %s7383_s25  ;;  %686 = vrot.lane.b32.xlu1 %v7871_v17, %s7382_s23 }
 0x26f   :  { %708 = vrot.lane.b32.xlu0 %v7868_v16, %s7383_s25  ;;  %688 = vrot.lane.b32.xlu1 %v7880_v18, %s7382_s23 }
 0x273   :  { %668 = vrot.lane.b32.xlu0 %v7906_v21, %s7381_s4  ;;  %690 = vrot.lane.b32.xlu1 %v7883_v19, %s7382_s23 }
 0x277   :  { %692 = vrot.lane.b32.xlu0 %v7906_v21, %s7382_s23  ;;  %694 = vrot.lane.b32.xlu1 %v7890_v20, %s7382_s23 }
 0x279   :  { %v7916_v22 = vpop.f32.mrb[8].mxu1 }
 0x27a   :  { %v6721_v23 = vpop.f32.mrb[9].mxu1  ;;  %v3097_v41 = vsel %vm728_vm2, %v7916_v22, -inf }
 0x27b   :  { %706 = vrot.lane.b32.xlu1 %v503_v15, %s7383_s25 }
 0x27d   :  { %v7919_v24 = vpop.f32.mrb[10].mxu1 }
 0x27e   :  { %v6726_v25 = vpop.f32.mrb[11].mxu1  ;;  %v3100_v38 = vsel %vm728_vm2, %v7919_v24, -inf }
 0x27f   :  { %710 = vrot.lane.b32.xlu1 %v7871_v17, %s7383_s25 }
 0x281   :  { %v7923_v26 = vpop.f32.mrb[16].mxu0 }
 0x282   :  { %v7925_v27 = vpop.f32.mrb[12].mxu1  ;;  %v6741_v28 = vpop.f32.mrb[17].mxu0  ;;  %v3109_v40 = vsel %vm728_vm2, %v7923_v26, -inf }
 0x283   :  { %v6731_v29 = vpop.f32.mrb[13].mxu1  ;;  %v3103_v39 = vsel %vm728_vm2, %v7925_v27, -inf }
 0x286   :  { %v7927_v30 = vpop.f32.mrb[14].mxu1  ;;  %v7929_v31 = vpop.f32.mrb[18].mxu0 }
 0x287   :  { %v6736_v32 = vpop.f32.mrb[15].mxu1  ;;  %v6751_v33 = vpop.f32.mrb[19].mxu0  ;;  %v3115_v14 = vsel %vm728_vm2, %v7929_v31, -inf  ;;  %v3106_v42 = vsel %vm728_vm2, %v7927_v30, -inf }
 0x28a   :  { %v7931_v34 = vpop.f32.mrb[16].mxu1 }
 0x28b   :  { %v6746_v35 = vpop.f32.mrb[17].mxu1  ;;  %v3112_v43 = vsel %vm728_vm2, %v7931_v34, -inf }
 0x28e   :  { %v7933_v36 = vpop.f32.mrb[18].mxu1 }
 0x28f   :  { %v6756_v37 = vpop.f32.mrb[19].mxu1  ;;  %v3118_v44 = vsel %vm728_vm2, %v7933_v36, -inf }
 0x296   :  { %3101 = vmax.xlane.f32.xlu0 %v3100_v38 }
 0x29a   :  { %3104 = vmax.xlane.f32.xlu0 %v3103_v39 }
 0x29e   :  { %3110 = vmax.xlane.f32.xlu0 %v3109_v40 }
 0x2a2   :  { %3116 = vmax.xlane.f32.xlu0 %v3115_v14 }
 0x2a3   :  { %3098 = vmax.xlane.f32.xlu1 %v3097_v41 }
 0x2a7   :  { %3107 = vmax.xlane.f32.xlu1 %v3106_v42 }
 0x2ab   :  { %3113 = vmax.xlane.f32.xlu1 %v3112_v43 }
 0x2af   :  { %3119 = vmax.xlane.f32.xlu1 %v3118_v44 }
 0x2c9   :  { %v7959_v52 = vpop.permute.xlu0 %656  ;;  %v7961_v53 = vpop.permute.xlu1 %658 }
 0x2cd   :  { %v7969_v58 = vpop.permute.xlu0 %660  ;;  %v7973_v61 = vpop.permute.xlu1 %662 }
 0x2d1   :  { %v7975_v62 = vpop.permute.xlu0 %664  ;;  %v7979_v0 = vpop.permute.xlu1 %666 }
 0x2d5   :  { %v7987_v6 = vpop.permute.xlu0 %680  ;;  %v7989_v7 = vpop.permute.xlu1 %670 }
 0x2d9   :  { %v7999_v15 = vpop.permute.xlu0 %684  ;;  %v8003_v25 = vpop.permute.xlu1 %682 }
 0x2dd   :  { %v8015_v40 = vpop.permute.xlu0 %704  ;;  %v8019_v41 = vpop.permute.xlu1 %686 }
 0x2de   :  { %8762 = vst [vmem:[#allocation18_spill] sm:$0xff] %v8015_v40  ;;  %8763 = vst [vmem:[#allocation19_spill] sm:$0xff] %v8019_v41 }
 0x2eb   :  { %v7951_v45 = vpop.f32.mrb[20].mxu1 }
 0x2ec   :  { %v7953_v46 = vpop.f32.mrb[20].mxu0  ;;  %v6766_v47 = vpop.f32.mrb[21].mxu1  ;;  %v3124_v48 = vsel %vm728_vm2, %v7951_v45, -inf }
 0x2ed   :  { %v6761_v49 = vpop.f32.mrb[21].mxu0  ;;  %3125 = vmax.xlane.f32.xlu1 %v3124_v48  ;;  %v3121_v51 = vsel %vm728_vm2, %v7953_v46, -inf }
 0x2ee   :  { %3122 = vmax.xlane.f32.xlu0 %v3121_v51 }
 0x2f3   :  { %v7963_v54 = vpop.f32.mrb[22].mxu1 }
 0x2f4   :  { %v7965_v55 = vpop.f32.mrb[22].mxu0  ;;  %v6776_v56 = vpop.f32.mrb[23].mxu1  ;;  %v3130_v57 = vsel %vm728_vm2, %v7963_v54, -inf }
 0x2f5   :  { %v6771_v59 = vpop.f32.mrb[23].mxu0  ;;  %3131 = vmax.xlane.f32.xlu1 %v3130_v57  ;;  %v3127_v60 = vsel %vm728_vm2, %v7965_v55, -inf  ;;  %v8031_v57 = vpop.permute.xlu0 %708 }
 0x2f6   :  { %3128 = vmax.xlane.f32.xlu0 %v3127_v60  ;;  %8764 = vst [vmem:[#allocation20_spill] sm:$0xff] %v8031_v57  ;;  %v8035_v60 = vpop.permute.xlu1 %688 }
 0x2f7   :  { %8765 = vst [vmem:[#allocation21_spill] sm:$0xff] %v8035_v60 }
 0x2fb   :  { %v7977_v63 = vpop.f32.mrb[24].mxu1 }
 0x2fc   :  { %v6786_v1 = vpop.f32.mrb[25].mxu1  ;;  %v3136_v2 = vsel %vm728_vm2, %v7977_v63, -inf }
 0x2fd   :  { %v7983_v3 = vpop.f32.mrb[24].mxu0  ;;  %3137 = vmax.xlane.f32.xlu1 %v3136_v2 }
 0x2fe   :  { %v6781_v4 = vpop.f32.mrb[25].mxu0  ;;  %v3133_v5 = vsel %vm728_vm2, %v7983_v3, -inf }
 0x2ff   :  { %3134 = vmax.xlane.f32.xlu0 %v3133_v5 }
 0x303   :  { %v7991_v8 = vpop.f32.mrb[26].mxu1 }
 0x304   :  { %v6796_v9 = vpop.f32.mrb[27].mxu1  ;;  %v3142_v10 = vsel %vm728_vm2, %v7991_v8, -inf }
 0x305   :  { %v7995_v11 = vpop.f32.mrb[26].mxu0  ;;  %3143 = vmax.xlane.f32.xlu1 %v3142_v10 }
 0x306   :  { %v6791_v12 = vpop.f32.mrb[27].mxu0  ;;  %v3139_v13 = vsel %vm728_vm2, %v7995_v11, -inf }
 0x307   :  { %3140 = vmax.xlane.f32.xlu0 %v3139_v13  ;;  %v8001_v23 = vpop.f32.mrb[28].mxu1 }
 0x308   :  { %v6806_v28 = vpop.f32.mrb[29].mxu1  ;;  %v3148_v29 = vsel %vm728_vm2, %v8001_v23, -inf }
 0x309   :  { %v8007_v32 = vpop.f32.mrb[28].mxu0  ;;  %3149 = vmax.xlane.f32.xlu1 %v3148_v29  ;;  %v8047_v28 = vpop.permute.xlu0 %668 }
 0x30a   :  { %v6801_v33 = vpop.f32.mrb[29].mxu0  ;;  %v3145_v35 = vsel %vm728_vm2, %v8007_v32, -inf }
 0x30b   :  { %3146 = vmax.xlane.f32.xlu0 %v3145_v35  ;;  %v8011_v37 = vpop.f32.mrb[30].mxu1  ;;  %v8051_v33 = vpop.permute.xlu1 %690 }
 0x30c   :  { %v6816_v38 = vpop.f32.mrb[31].mxu1  ;;  %v3154_v39 = vsel %vm728_vm2, %v8011_v37, -inf  ;;  %8766 = vst [vmem:[#allocation22_spill] sm:$0xff] %v8051_v33 }
 0x30d   :  { %v8017_v14 = vpop.f32.mrb[30].mxu0  ;;  %3155 = vmax.xlane.f32.xlu1 %v3154_v39 }
 0x30e   :  { %v6811_v42 = vpop.f32.mrb[31].mxu0  ;;  %v3151_v43 = vsel %vm728_vm2, %v8017_v14, -inf }
 0x30f   :  { %3152 = vmax.xlane.f32.xlu0 %v3151_v43  ;;  %v8023_v44 = vpop.f32.mrb[32].mxu1 }
 0x310   :  { %v6826_v47 = vpop.f32.mrb[33].mxu1  ;;  %v3160_v48 = vsel %vm728_vm2, %v8023_v44, -inf }
 0x311   :  { %v8027_v49 = vpop.f32.mrb[32].mxu0  ;;  %3161 = vmax.xlane.f32.xlu1 %v3160_v48 }
 0x312   :  { %v6821_v51 = vpop.f32.mrb[33].mxu0  ;;  %v3157_v56 = vsel %vm728_vm2, %v8027_v49, -inf }
 0x313   :  { %3158 = vmax.xlane.f32.xlu0 %v3157_v56  ;;  %v8033_v59 = vpop.f32.mrb[34].mxu1  ;;  %v8063_v56 = vpop.permute.xlu0 %692 }
 0x314   :  { %v6836_v1 = vpop.f32.mrb[35].mxu1  ;;  %v3166_v2 = vsel %vm728_vm2, %v8033_v59, -inf  ;;  %8767 = vst [vmem:[#allocation23_spill] sm:$0xff] %v8063_v56 }
 0x315   :  { %v8039_v4 = vpop.f32.mrb[34].mxu0  ;;  %3167 = vmax.xlane.f32.xlu1 %v3166_v2  ;;  %v8067_v2 = vpop.permute.xlu1 %694 }
 0x316   :  { %v6831_v5 = vpop.f32.mrb[35].mxu0  ;;  %v3163_v9 = vsel %vm728_vm2, %v8039_v4, -inf  ;;  %8768 = vst [vmem:[#allocation24_spill] sm:$0xff] %v8067_v2 }
 0x317   :  { %3164 = vmax.xlane.f32.xlu0 %v3163_v9  ;;  %v8043_v10 = vpop.f32.mrb[36].mxu1 }
 0x318   :  { %v6846_v12 = vpop.f32.mrb[37].mxu1  ;;  %v3172_v13 = vsel %vm728_vm2, %v8043_v10, -inf }
 0x319   :  { %v8049_v29 = vpop.f32.mrb[36].mxu0  ;;  %3173 = vmax.xlane.f32.xlu1 %v3172_v13 }
 0x31a   :  { %v6841_v35 = vpop.f32.mrb[37].mxu0  ;;  %v3169_v38 = vsel %vm728_vm2, %v8049_v29, -inf }
 0x31b   :  { %3170 = vmax.xlane.f32.xlu0 %v3169_v38  ;;  %v8055_v39 = vpop.f32.mrb[38].mxu1 }
 0x31c   :  { %v6856_v42 = vpop.f32.mrb[39].mxu1  ;;  %v3178_v43 = vsel %vm728_vm2, %v8055_v39, -inf }
 0x31d   :  { %v8059_v47 = vpop.f32.mrb[38].mxu0  ;;  %3179 = vmax.xlane.f32.xlu1 %v3178_v43 }
 0x31e   :  { %v6851_v48 = vpop.f32.mrb[39].mxu0  ;;  %v3175_v51 = vsel %vm728_vm2, %v8059_v47, -inf }
 0x31f   :  { %3176 = vmax.xlane.f32.xlu0 %v3175_v51  ;;  %v8065_v1 = vpop.f32.mrb[40].mxu1  ;;  %v8079_v51 = vpop.permute.xlu1 %706 }
 0x320   :  { %v6866_v5 = vpop.f32.mrb[41].mxu1  ;;  %v3184_v9 = vsel %vm728_vm2, %v8065_v1, -inf  ;;  %8769 = vst [vmem:[#allocation25_spill] sm:$0xff] %v8079_v51 }
 0x321   :  { %v8071_v12 = vpop.f32.mrb[40].mxu0  ;;  %3185 = vmax.xlane.f32.xlu1 %v3184_v9 }
 0x322   :  { %v6861_v13 = vpop.f32.mrb[41].mxu0  ;;  %v3181_v35 = vsel %vm728_vm2, %v8071_v12, -inf }
 0x323   :  { %3182 = vmax.xlane.f32.xlu0 %v3181_v35  ;;  %v3102_v38 = vpop.xlane.xlu0 %3101  ;;  %v8085_v35 = vpop.permute.xlu1 %710 }
 0x324   :  { %v8075_v42 = vpop.f32.mrb[42].mxu1  ;;  %8770 = vst [vmem:[#allocation26_spill] sm:$0xff] %v8085_v35  ;;  %v3194_v40 = vsub.f32 %v7919_v24, %v3102_v38 }
 0x325   :  { %v6876_v43 = vpop.f32.mrb[43].mxu1  ;;  %v3190_v48 = vsel %vm728_vm2, %v8075_v42, -inf }
 0x326   :  { %v8081_v5 = vpop.f32.mrb[42].mxu0  ;;  %3191 = vmax.xlane.f32.xlu1 %v3190_v48  ;;  %v3227_v60 = vmul.f32 1.442695, %v3194_v40 }
 0x327   :  { %v6871_v50 = vpop.f32.mrb[43].mxu0  ;;  %v3187_v9 = vsel %vm728_vm2, %v8081_v5, -inf  ;;  %v3105_v13 = vpop.xlane.xlu0 %3104 }
 0x328   :  { %3188 = vmax.xlane.f32.xlu0 %v3187_v9  ;;  %v3195_v50 = vsub.f32 %v7925_v27, %v3105_v13 }
 0x32a   :  { %v3229_v9 = vmul.f32 1.442695, %v3195_v50 }
 0x32b   :  { %v3111_v57 = vpop.xlane.xlu0 %3110 }
 0x32c   :  { %v3197_v41 = vsub.f32 %v7923_v26, %v3111_v57 }
 0x32e   :  { %v3233_v24 = vmul.f32 1.442695, %v3197_v41 }
 0x32f   :  { %v3117_v43 = vpop.xlane.xlu0 %3116 }
 0x330   :  { %v3199_v2 = vsub.f32 %v7929_v31, %v3117_v43  ;;  %v3099_v56 = vpop.xlane.xlu1 %3098 }
 0x331   :  { %v3193_v51 = vsub.f32 %v7916_v22, %v3099_v56 }
 0x332   :  { %v3237_v33 = vmul.f32 1.442695, %v3199_v2 }
 0x333   :  { %v3225_v48 = vmul.f32 1.442695, %v3193_v51 }
 0x334   :  { %7101 = vpow2.f32 %v3237_v33  ;;  %v3108_v35 = vpop.xlane.xlu1 %3107 }
 0x335   :  { %7103 = vpow2.f32 %v3225_v48  ;;  %v3196_v38 = vsub.f32 %v7927_v30, %v3108_v35 }
 0x336   :  { %7105 = vpow2.f32 %v3227_v60 }
 0x337   :  { %7107 = vpow2.f32 %v3229_v9  ;;  %v3231_v22 = vmul.f32 1.442695, %v3196_v38 }
 0x338   :  { %7109 = vpow2.f32 %v3233_v24  ;;  %v3114_v51 = vpop.xlane.xlu1 %3113 }
 0x339   :  { %7111 = vpow2.f32 %v3231_v22  ;;  %v3198_v13 = vsub.f32 %v7931_v34, %v3114_v51 }
 0x33b   :  { %v3235_v50 = vmul.f32 1.442695, %v3198_v13 }
 0x33c   :  { %v3120_v35 = vpop.xlane.xlu1 %3119 }
 0x33d   :  { %v3200_v48 = vsub.f32 %v7933_v36, %v3120_v35  ;;  %7113 = vpow2.f32 %v3235_v50 }
 0x33e   :  { %v8093_v31 = vpop.eup %7101 }
 0x33f   :  { %v8095_v43 = vpop.eup %7103  ;;  %v3307_v27 = vsel %vm728_vm2, %v8093_v31, 0.0  ;;  %v3239_v9 = vmul.f32 1.442695, %v3200_v48 }
 0x340   :  { %3308 = vadd.xlane.f32.xlu0 %v3307_v27  ;;  %v3289_v40 = vsel %vm728_vm2, %v8095_v43, 0.0  ;;  %v8101_v60 = vpop.eup %7105 }
 0x341   :  { %3290 = vadd.xlane.f32.xlu1 %v3289_v40  ;;  %v3292_v26 = vsel %vm728_vm2, %v8101_v60, 0.0  ;;  %v8105_v30 = vpop.eup %7107  ;;  %7115 = vpow2.f32 %v3239_v9 }
 0x342   :  { %v3295_v41 = vsel %vm728_vm2, %v8105_v30, 0.0  ;;  %v8109_v57 = vpop.eup %7109 }
 0x343   :  { %v3301_v33 = vsel %vm728_vm2, %v8109_v57, 0.0  ;;  %v8113_v56 = vpop.eup %7111 }
 0x344   :  { %v3298_v2 = vsel %vm728_vm2, %v8113_v56, 0.0 }
 0x345   :  { %3293 = vadd.xlane.f32.xlu1 %v3292_v26 }
 0x349   :  { %3296 = vadd.xlane.f32.xlu1 %v3295_v41  ;;  %v8125_v41 = vpop.eup %7113 }
 0x34b   :  { %v8131_v13 = vpop.eup %7115 }
 0x34c   :  { %v3310_v35 = vsel %vm728_vm2, %v8131_v13, 0.0 }
 0x34d   :  { %3302 = vadd.xlane.f32.xlu1 %v3301_v33 }
 0x351   :  { %3299 = vadd.xlane.f32.xlu1 %v3298_v2 }
 0x356   :  { %712 = vrot.lane.b32.xlu0 %v7880_v18, %s7383_s25 }
 0x362   :  { %714 = vrot.lane.b32.xlu1 %v7883_v19, %s7383_s25 }
 0x37a   :  { %v3126_v24 = vpop.xlane.xlu1 %3125 }
 0x37b   :  { %v3202_v38 = vsub.f32 %v7951_v45, %v3126_v24  ;;  %v3123_v22 = vpop.xlane.xlu0 %3122  ;;  %v3304_v45 = vsel %vm728_vm2, %v8125_v41, 0.0 }
 0x37c   :  { %v3201_v27 = vsub.f32 %v7953_v46, %v3123_v22 }
 0x37d   :  { %v3243_v40 = vmul.f32 1.442695, %v3202_v38 }
 0x37e   :  { %v3241_v26 = vmul.f32 1.442695, %v3201_v27 }
 0x37f   :  { %7117 = vpow2.f32 %v3243_v40 }
 0x380   :  { %7119 = vpow2.f32 %v3241_v26 }
 0x382   :  { %v3132_v33 = vpop.xlane.xlu1 %3131 }
 0x383   :  { %v3204_v34 = vsub.f32 %v7963_v54, %v3132_v33  ;;  %v3129_v2 = vpop.xlane.xlu0 %3128 }
 0x384   :  { %v3203_v36 = vsub.f32 %v7965_v55, %v3129_v2 }
 0x385   :  { %v3247_v51 = vmul.f32 1.442695, %v3204_v34 }
 0x386   :  { %3305 = vadd.xlane.f32.xlu1 %v3304_v45  ;;  %v3245_v46 = vmul.f32 1.442695, %v3203_v36 }
 0x387   :  { %7121 = vpow2.f32 %v3247_v51 }
 0x388   :  { %7123 = vpow2.f32 %v3245_v46 }
 0x389   :  { %v8135_v50 = vpop.eup %7117 }
 0x38a   :  { %v3138_v48 = vpop.xlane.xlu1 %3137  ;;  %3311 = vadd.xlane.f32.xlu1 %v3310_v35  ;;  %v3316_v38 = vsel %vm728_vm2, %v8135_v50, 0.0  ;;  %v8141_v22 = vpop.eup %7119 }
 0x38b   :  { %v3206_v54 = vsub.f32 %v7977_v63, %v3138_v48  ;;  %v3313_v40 = vsel %vm728_vm2, %v8141_v22, 0.0 }
 0x38c   :  { %v3135_v55 = vpop.xlane.xlu0 %3134 }
 0x38d   :  { %v3251_v9 = vmul.f32 1.442695, %v3206_v54  ;;  %v3205_v24 = vsub.f32 %v7983_v3, %v3135_v55 }
 0x38e   :  { %3317 = vadd.xlane.f32.xlu1 %v3316_v38 }
 0x38f   :  { %7125 = vpow2.f32 %v3251_v9  ;;  %v3249_v27 = vmul.f32 1.442695, %v3205_v24 }
 0x391   :  { %v8145_v26 = vpop.eup %7121  ;;  %7127 = vpow2.f32 %v3249_v27 }
 0x392   :  { %v3144_v33 = vpop.xlane.xlu1 %3143  ;;  %3314 = vadd.xlane.f32.xlu1 %v3313_v40  ;;  %v3322_v36 = vsel %vm728_vm2, %v8145_v26, 0.0  ;;  %v8151_v51 = vpop.eup %7123 }
 0x393   :  { %v3208_v63 = vsub.f32 %v7991_v8, %v3144_v33  ;;  %v3319_v55 = vsel %vm728_vm2, %v8151_v51, 0.0 }
 0x394   :  { %v3141_v34 = vpop.xlane.xlu0 %3140 }
 0x395   :  { %v3255_v3 = vmul.f32 1.442695, %v3208_v63  ;;  %v3207_v2 = vsub.f32 %v7995_v11, %v3141_v34 }
 0x396   :  { %v3150_v45 = vpop.xlane.xlu1 %3149  ;;  %3323 = vadd.xlane.f32.xlu1 %v3322_v36 }
 0x397   :  { %v3253_v46 = vmul.f32 1.442695, %v3207_v2  ;;  %v3210_v35 = vsub.f32 %v8001_v23, %v3150_v45  ;;  %7129 = vpow2.f32 %v3255_v3 }
 0x398   :  { %v3147_v48 = vpop.xlane.xlu0 %3146 }
 0x399   :  { %7131 = vpow2.f32 %v3253_v46  ;;  %v3259_v54 = vmul.f32 1.442695, %v3210_v35  ;;  %v3209_v8 = vsub.f32 %v8007_v32, %v3147_v48  ;;  %v8157_v11 = vpop.eup %7125 }
 0x39a   :  { %v3156_v9 = vpop.xlane.xlu1 %3155  ;;  %3320 = vadd.xlane.f32.xlu1 %v3319_v55  ;;  %v3328_v33 = vsel %vm728_vm2, %v8157_v11, 0.0 }
 0x39b   :  { %v3257_v24 = vmul.f32 1.442695, %v3209_v8  ;;  %v3212_v38 = vsub.f32 %v8011_v37, %v3156_v9  ;;  %7133 = vpow2.f32 %v3259_v54  ;;  %v8163_v32 = vpop.eup %7127 }
 0x39c   :  { %v3153_v27 = vpop.xlane.xlu0 %3152  ;;  %v3325_v45 = vsel %vm728_vm2, %v8163_v32, 0.0 }
 0x39d   :  { %7135 = vpow2.f32 %v3257_v24  ;;  %v3263_v23 = vmul.f32 1.442695, %v3212_v38  ;;  %v3211_v40 = vsub.f32 %v8017_v14, %v3153_v27 }
 0x39e   :  { %v3162_v63 = vpop.xlane.xlu1 %3161  ;;  %3329 = vadd.xlane.f32.xlu1 %v3328_v33 }
 0x39f   :  { %v3261_v34 = vmul.f32 1.442695, %v3211_v40  ;;  %v3214_v3 = vsub.f32 %v8023_v44, %v3162_v63  ;;  %7137 = vpow2.f32 %v3263_v23 }
 0x3a0   :  { %v3159_v2 = vpop.xlane.xlu0 %3158 }
 0x3a1   :  { %7139 = vpow2.f32 %v3261_v34  ;;  %v3267_v37 = vmul.f32 1.442695, %v3214_v3  ;;  %v3213_v36 = vsub.f32 %v8027_v49, %v3159_v2  ;;  %v8169_v14 = vpop.eup %7129 }
 0x3a2   :  { %v3168_v46 = vpop.xlane.xlu1 %3167  ;;  %3326 = vadd.xlane.f32.xlu1 %v3325_v45  ;;  %v3334_v9 = vsel %vm728_vm2, %v8169_v14, 0.0 }
 0x3a3   :  { %v8171_v35 = vpop.eup %7131  ;;  %v3265_v48 = vmul.f32 1.442695, %v3213_v36  ;;  %v3216_v54 = vsub.f32 %v8033_v59, %v3168_v46  ;;  %7141 = vpow2.f32 %v3267_v37 }
 0x3a4   :  { %v3165_v44 = vpop.xlane.xlu0 %3164  ;;  %v3331_v8 = vsel %vm728_vm2, %v8171_v35, 0.0 }
 0x3a5   :  { %7143 = vpow2.f32 %v3265_v48  ;;  %v3271_v55 = vmul.f32 1.442695, %v3216_v54  ;;  %v3215_v49 = vsub.f32 %v8039_v4, %v3165_v44  ;;  %3332 = vadd.xlane.f32.xlu0 %v3331_v8  ;;  %v8179_v24 = vpop.eup %7133 }
 0x3a6   :  { %v3174_v38 = vpop.xlane.xlu1 %3173  ;;  %3335 = vadd.xlane.f32.xlu1 %v3334_v9  ;;  %v3340_v34 = vsel %vm728_vm2, %v8179_v24, 0.0 }
 0x3a7   :  { %v8181_v27 = vpop.eup %7135  ;;  %7145 = vpow2.f32 %v3271_v55  ;;  %v3269_v59 = vmul.f32 1.442695, %v3215_v49  ;;  %v3218_v23 = vsub.f32 %v8043_v10, %v3174_v38 }
 0x3a8   :  { %v3171_v40 = vpop.xlane.xlu0 %3170  ;;  %v3337_v33 = vsel %vm728_vm2, %v8181_v27, 0.0 }
 0x3a9   :  { %7147 = vpow2.f32 %v3269_v59  ;;  %v3275_v4 = vmul.f32 1.442695, %v3218_v23  ;;  %v3217_v63 = vsub.f32 %v8049_v29, %v3171_v40  ;;  %3338 = vadd.xlane.f32.xlu0 %v3337_v33  ;;  %v8189_v3 = vpop.eup %7137 }
 0x3aa   :  { %v3180_v2 = vpop.xlane.xlu1 %3179  ;;  %3341 = vadd.xlane.f32.xlu1 %v3340_v34  ;;  %v3346_v54 = vsel %vm728_vm2, %v8189_v3, 0.0 }
 0x3ab   :  { %v8191_v37 = vpop.eup %7139  ;;  %7149 = vpow2.f32 %v3275_v4  ;;  %v3273_v10 = vmul.f32 1.442695, %v3217_v63  ;;  %v3220_v36 = vsub.f32 %v8055_v39, %v3180_v2 }
 0x3ac   :  { %v3177_v45 = vpop.xlane.xlu0 %3176  ;;  %v3343_v46 = vsel %vm728_vm2, %v8191_v37, 0.0 }
 0x3ad   :  { %7151 = vpow2.f32 %v3273_v10  ;;  %v3279_v29 = vmul.f32 1.442695, %v3220_v36  ;;  %v3219_v48 = vsub.f32 %v8059_v47, %v3177_v45  ;;  %3344 = vadd.xlane.f32.xlu0 %v3343_v46  ;;  %v8199_v44 = vpop.eup %7141 }
 0x3ae   :  { %v3186_v8 = vpop.xlane.xlu1 %3185  ;;  %3347 = vadd.xlane.f32.xlu1 %v3346_v54  ;;  %v3352_v40 = vsel %vm728_vm2, %v8199_v44, 0.0 }
 0x3af   :  { %v8201_v55 = vpop.eup %7143  ;;  %7153 = vpow2.f32 %v3279_v29  ;;  %v3277_v39 = vmul.f32 1.442695, %v3219_v48  ;;  %v3222_v49 = vsub.f32 %v8065_v1, %v3186_v8 }
 0x3b0   :  { %v3183_v9 = vpop.xlane.xlu0 %3182  ;;  %v3349_v38 = vsel %vm728_vm2, %v8201_v55, 0.0 }
 0x3b1   :  { %v8206_v59 = vpop.eup %7145  ;;  %7155 = vpow2.f32 %v3277_v39  ;;  %v3283_v47 = vmul.f32 1.442695, %v3222_v49  ;;  %v3221_v23 = vsub.f32 %v8071_v12, %v3183_v9  ;;  %3350 = vadd.xlane.f32.xlu0 %v3349_v38 }
 0x3b2   :  { %3353 = vadd.xlane.f32.xlu1 %v3352_v40  ;;  %v3358_v33 = vsel %vm728_vm2, %v8206_v59, 0.0 }
 0x3b3   :  { %v8213_v4 = vpop.eup %7147  ;;  %7157 = vpow2.f32 %v3283_v47  ;;  %v3281_v1 = vmul.f32 1.442695, %v3221_v23  ;;  %v3192_v63 = vpop.xlane.xlu1 %3191 }
 0x3b4   :  { %v3224_v34 = vsub.f32 %v8075_v42, %v3192_v63  ;;  %v3355_v12 = vsel %vm728_vm2, %v8213_v4, 0.0 }
 0x3b5   :  { %v8216_v2 = vpop.eup %7149  ;;  %7159 = vpow2.f32 %v3281_v1  ;;  %v3189_v10 = vpop.xlane.xlu0 %3188  ;;  %3359 = vadd.xlane.f32.xlu0 %v3358_v33 }
 0x3b6   :  { %v3287_v36 = vmul.f32 1.442695, %v3224_v34  ;;  %v3223_v45 = vsub.f32 %v8081_v5, %v3189_v10  ;;  %3356 = vadd.xlane.f32.xlu1 %v3355_v12  ;;  %v3364_v46 = vsel %vm728_vm2, %v8216_v2, 0.0 }
 0x3b7   :  { %v8223_v29 = vpop.eup %7151 }
 0x3b8   :  { %7161 = vpow2.f32 %v3287_v36  ;;  %v3285_v48 = vmul.f32 1.442695, %v3223_v45  ;;  %v3361_v54 = vsel %vm728_vm2, %v8223_v29, 0.0 }
 0x3b9   :  { %v8225_v42 = vpop.eup %7153  ;;  %3365 = vadd.xlane.f32.xlu0 %v3364_v46 }
 0x3ba   :  { %7163 = vpow2.f32 %v3285_v48  ;;  %3362 = vadd.xlane.f32.xlu1 %v3361_v54  ;;  %v3370_v8 = vsel %vm728_vm2, %v8225_v42, 0.0  ;;  %v8771_v54 = vmov 0.0  }
 0x3bb   :  { %v8231_v5 = vpop.eup %7155 }
 0x3bc   :  { %v3367_v49 = vsel %vm728_vm2, %v8231_v5, 0.0 }
 0x3bd   :  { %v8233_v39 = vpop.eup %7157  ;;  %3371 = vadd.xlane.f32.xlu0 %v3370_v8 }
 0x3be   :  { %3368 = vadd.xlane.f32.xlu1 %v3367_v49  ;;  %v3376_v9 = vsel %vm728_vm2, %v8233_v39, 0.0 }
 0x3bf   :  { %v8239_v38 = vpop.eup %7159 }
 0x3c0   :  { %v3373_v47 = vsel %vm728_vm2, %v8239_v38, 0.0 }
 0x3c1   :  { %3377 = vadd.xlane.f32.xlu0 %v3376_v9 }
 0x3c2   :  { %v8243_v23 = vpop.eup %7161  ;;  %3374 = vadd.xlane.f32.xlu1 %v3373_v47 }
 0x3c3   :  { %v3382_v40 = vsel %vm728_vm2, %v8243_v23, 0.0 }
 0x3c4   :  { %v8247_v33 = vpop.eup %7163 }
 0x3c5   :  { %3383 = vadd.xlane.f32.xlu0 %v3382_v40  ;;  %v3379_v1 = vsel %vm728_vm2, %v8247_v33, 0.0 }
 0x3c6   :  { %3380 = vadd.xlane.f32.xlu1 %v3379_v1 }
 0x3cd   :  { %v3309_v36 = vpop.xlane.xlu0 %3308 }
 0x3ce   :  { %v3291_v63 = vpop.xlane.xlu1 %3290 }
 0x3cf   :  { %7165 = vrcp.f32 %v3291_v63 }
 0x3d2   :  { %v3294_v34 = vpop.xlane.xlu1 %3293 }
 0x3d3   :  { %7167 = vrcp.f32 %v3294_v34 }
 0x3d6   :  { %v3297_v10 = vpop.xlane.xlu1 %3296 }
 0x3d7   :  { %7169 = vrcp.f32 %v3297_v10  ;;  %718 = vrot.lane.b32.xlu1 %v7890_v20, %s7383_s25 }
 0x3d9   :  { %v7166_v12 = vpop.eup %7165 }
 0x3da   :  { %v3303_v45 = vpop.xlane.xlu1 %3302  ;;  %v8254_v46 = vmul.f32 %v7166_v12, %v8095_v43 }
 0x3db   :  { %716 = vrot.lane.b32.xlu0 %v7906_v21, %s7383_s25  ;;  %7171 = vrcp.f32 %v3303_v45 }
 0x3dc   :  { %6880 = vmatmul.mubr.msk.f32.vlgmr.msra.gmra.mrb[44].mxu0 %vm728_vm2, %v8254_v46  ;;  %7173 = vrcp.f32 %v3309_v36  ;;  %v8339_v36 = vpop.permute.xlu0 %712 }
 0x3dd   :  { %v7168_v48 = vpop.eup %7167  ;;  %6888 = vmatpush3.msra.mxu0 %v7868_v16  ;;  %6889 = vmatprep.mubr.msk.f32.mxu0 %vm7380_vm1, %v8771_v54 }
 0x3de   :  { %v3300_v8 = vpop.xlane.xlu1 %3299  ;;  %v8264_v49 = vmul.f32 %v7168_v48, %v8101_v60  ;;  %6897 = vmatprep.subr.mxu0 %v8771_v54 }
 0x3df   :  { %7175 = vrcp.f32 %v3300_v8 }
 0x3e0   :  { %6885 = vmatmul.mubr.msk.f32.vlgmr.msra.gmra.mrb[44].mxu1 %vm728_vm2, %v8264_v49 }
 0x3e1   :  { %v7170_v43 = vpop.eup %7169  ;;  %6893 = vmatpush3.msra.mxu1 %v7871_v17  ;;  %6894 = vmatprep.mubr.msk.f32.mxu1 %vm7380_vm1, %v8771_v54 }
 0x3e2   :  { %v8273_v16 = vmul.f32 %v7170_v43, %v8105_v30  ;;  %6902 = vmatprep.subr.mxu1 %v8771_v54 }
 0x3e4   :  { %6890 = vmatmul.mubr.msk.f32.vlgmr.msra.gmra.mrb[46].mxu0 %vm728_vm2, %v8273_v16 }
 0x3e5   :  { %v7172_v60 = vpop.eup %7171  ;;  %6898 = vmatpush3.msra.mxu0 %v7880_v18  ;;  %6899 = vmatprep.mubr.msk.f32.mxu0 %vm7380_vm1, %v8771_v54 }
 0x3e6   :  { %6907 = vmatprep.subr.mxu0 %v8771_v54  ;;  %v8283_v17 = vmul.f32 %v7172_v60, %v8109_v57  ;;  %v7174_v9 = vpop.eup %7173 }
 0x3e7   :  { %v8291_v18 = vmul.f32 %v7174_v9, %v8093_v31 }
 0x3e8   :  { %6900 = vmatmul.mubr.msk.f32.vlgmr.msra.gmra.mrb[48].mxu0 %vm728_vm2, %v8283_v17 }
 0x3e9   :  { %v7176_v30 = vpop.eup %7175  ;;  %6908 = vmatpush3.msra.mxu0 %v7906_v21  ;;  %6909 = vmatprep.mubr.msk.f32.mxu0 %vm7380_vm1, %v8771_v54  ;;  %v8309_v21 = vpop.permute.xlu1 %714 }
 0x3ea   :  { %6917 = vmatprep.subr.mxu0 %v8771_v54  ;;  %v8295_v47 = vmul.f32 %v7176_v30, %v8113_v56 }
 0x3ec   :  { %6895 = vmatmul.mubr.msk.f32.vlgmr.msra.gmra.mrb[46].mxu1 %vm728_vm2, %v8295_v47  ;;  %6910 = vmatmul.mubr.msk.f32.vlgmr.msra.gmra.mrb[50].mxu0 %vm728_vm2, %v8291_v18 }
 0x3ed   :  { %6903 = vmatpush3.msra.mxu1 %v7883_v19  ;;  %6918 = vmatpush3.msra.mxu0 %v7959_v52 }
 0x3ee   :  { %6904 = vmatprep.mubr.msk.f32.mxu1 %vm7380_vm1, %v8771_v54  ;;  %6912 = vmatprep.subr.mxu1 %v8771_v54 }
 0x3ef   :  { %6919 = vmatprep.mubr.msk.f32.mxu0 %vm7380_vm1, %v8771_v54  ;;  %6927 = vmatprep.subr.mxu0 %v8771_v54 }
 0x413   :  { %v3306_v31 = vpop.xlane.xlu1 %3305 }
 0x414   :  { %7177 = vrcp.f32 %v3306_v31 }
 0x417   :  { %v3312_v57 = vpop.xlane.xlu1 %3311 }
 0x418   :  { %7179 = vrcp.f32 %v3312_v57 }
 0x41b   :  { %v3318_v56 = vpop.xlane.xlu1 %3317 }
 0x41c   :  { %7181 = vrcp.f32 %v3318_v56 }
 0x41e   :  { %v7178_v19 = vpop.eup %7177 }
 0x41f   :  { %v8312_v52 = vmul.f32 %v7178_v19, %v8125_v41  ;;  %v3315_v40 = vpop.xlane.xlu1 %3314 }
 0x420   :  { %7183 = vrcp.f32 %v3315_v40 }
 0x421   :  { %6905 = vmatmul.mubr.msk.f32.vlgmr.msra.gmra.mrb[48].mxu1 %vm728_vm2, %v8312_v52 }
 0x422   :  { %v7180_v1 = vpop.eup %7179  ;;  %6913 = vmatpush3.msra.mxu1 %v7890_v20  ;;  %6914 = vmatprep.mubr.msk.f32.mxu1 %vm7380_vm1, %v8771_v54 }
 0x423   :  { %v8320_v63 = vmul.f32 %v7180_v1, %v8131_v13  ;;  %v3324_v34 = vpop.xlane.xlu1 %3323  ;;  %6922 = vmatprep.subr.mxu1 %v8771_v54 }
 0x424   :  { %7185 = vrcp.f32 %v3324_v34 }
 0x425   :  { %6915 = vmatmul.mubr.msk.f32.vlgmr.msra.gmra.mrb[50].mxu1 %vm728_vm2, %v8320_v63 }
 0x426   :  { %v7182_v41 = vpop.eup %7181  ;;  %6923 = vmatpush3.msra.mxu1 %v7961_v53  ;;  %6924 = vmatprep.mubr.msk.f32.mxu1 %vm7380_vm1, %v8771_v54 }
 0x427   :  { %v3321_v20 = vpop.xlane.xlu1 %3320  ;;  %6932 = vmatprep.subr.mxu1 %v8771_v54  ;;  %v3404_v10 = vmul.f32 %v7182_v41, %v8135_v50 }
 0x428   :  { %7187 = vrcp.f32 %v3321_v20 }
 0x429   :  { %5909 = vrot.lane.b32.xlu1 %v3404_v10, %s7374_s10  ;;  %6925 = vmatmul.mubr.msk.f32.vlgmr.msra.gmra.mrb[52].mxu1 %vm728_vm2, %v3404_v10 }
 0x42a   :  { %v7184_v13 = vpop.eup %7183  ;;  %6933 = vmatpush3.msra.mxu1 %v7973_v61  ;;  %6934 = vmatprep.mubr.msk.f32.mxu1 %vm7380_vm1, %v8771_v54 }
 0x42b   :  { %v3330_v53 = vpop.xlane.xlu1 %3329  ;;  %v3402_v12 = vmul.f32 %v7184_v13, %v8141_v22  ;;  %6942 = vmatprep.subr.mxu1 %v8771_v54 }
 0x42c   :  { %7189 = vrcp.f32 %v3330_v53  ;;  %v8773_v53 = vld [vmem:[#allocation21_spill] sm:$0xff] }
 0x42d   :  { %5907 = vrot.lane.b32.xlu0 %v3402_v12, %s7374_s10  ;;  %6920 = vmatmul.mubr.msk.f32.vlgmr.msra.gmra.mrb[52].mxu0 %vm728_vm2, %v3402_v12 }
 0x42e   :  { %v7186_v50 = vpop.eup %7185  ;;  %6928 = vmatpush3.msra.mxu0 %v7969_v58  ;;  %6929 = vmatprep.mubr.msk.f32.mxu0 %vm7380_vm1, %v8771_v54 }
 0x42f   :  { %v3327_v61 = vpop.xlane.xlu1 %3326  ;;  %v3408_v45 = vmul.f32 %v7186_v50, %v8145_v26  ;;  %6937 = vmatprep.subr.mxu0 %v8771_v54  ;;  %v8774_v50 = vld [vmem:[#allocation22_spill] sm:$0xff] }
 0x430   :  { %7191 = vrcp.f32 %v3327_v61 }
 0x431   :  { %5913 = vrot.lane.b32.xlu1 %v3408_v45, %s7374_s10  ;;  %6935 = vmatmul.mubr.msk.f32.vlgmr.msra.gmra.mrb[54].mxu1 %vm728_vm2, %v3408_v45 }
 0x432   :  { %v7188_v22 = vpop.eup %7187  ;;  %v3333_v48 = vpop.xlane.xlu0 %3332  ;;  %6943 = vmatpush3.msra.mxu1 %v7979_v0  ;;  %6944 = vmatprep.mubr.msk.f32.mxu1 %vm7380_vm1, %v8771_v54 }
 0x433   :  { %7193 = vrcp.f32 %v3333_v48  ;;  %v3336_v58 = vpop.xlane.xlu1 %3335  ;;  %v3406_v8 = vmul.f32 %v7188_v22, %v8151_v51  ;;  %6952 = vmatprep.subr.mxu1 %v8771_v54 }
 0x434   :  { %7195 = vrcp.f32 %v3336_v58 }
 0x435   :  { %5911 = vrot.lane.b32.xlu0 %v3406_v8, %s7374_s10  ;;  %6930 = vmatmul.mubr.msk.f32.vlgmr.msra.gmra.mrb[54].mxu0 %vm728_vm2, %v3406_v8 }
 0x436   :  { %v7190_v26 = vpop.eup %7189  ;;  %v3339_v43 = vpop.xlane.xlu0 %3338  ;;  %6938 = vmatpush3.msra.mxu0 %v7975_v62  ;;  %6939 = vmatprep.mubr.msk.f32.mxu0 %vm7380_vm1, %v8771_v54 }
 0x437   :  { %7197 = vrcp.f32 %v3339_v43  ;;  %v3342_v0 = vpop.xlane.xlu1 %3341  ;;  %v3412_v60 = vmul.f32 %v7190_v26, %v8157_v11  ;;  %6947 = vmatprep.subr.mxu0 %v8771_v54 }
 0x438   :  { %7199 = vrcp.f32 %v3342_v0 }
 0x439   :  { %5917 = vrot.lane.b32.xlu1 %v3412_v60, %s7374_s10  ;;  %6945 = vmatmul.mubr.msk.f32.vlgmr.msra.gmra.mrb[56].mxu1 %vm728_vm2, %v3412_v60  ;;  %v8777_v60 = vld [vmem:[#allocation25_spill] sm:$0xff] }
 0x43a   :  { %v7192_v51 = vpop.eup %7191  ;;  %v3345_v9 = vpop.xlane.xlu0 %3344  ;;  %6953 = vmatpush3.msra.mxu1 %v7989_v7  ;;  %6954 = vmatprep.mubr.msk.f32.mxu1 %vm7380_vm1, %v8771_v54 }
 0x43b   :  { %7201 = vrcp.f32 %v3345_v9  ;;  %v3348_v62 = vpop.xlane.xlu1 %3347  ;;  %v3410_v30 = vmul.f32 %v7192_v51, %v8163_v32  ;;  %6962 = vmatprep.subr.mxu1 %v8771_v54 }
 0x43c   :  { %7203 = vrcp.f32 %v3348_v62 }
 0x43d   :  { %v7194_v11 = vpop.eup %7193  ;;  %5915 = vrot.lane.b32.xlu0 %v3410_v30, %s7374_s10  ;;  %6940 = vmatmul.mubr.msk.f32.vlgmr.msra.gmra.mrb[56].mxu0 %vm728_vm2, %v3410_v30 }
 0x43e   :  { %v7196_v31 = vpop.eup %7195  ;;  %v3351_v57 = vpop.xlane.xlu0 %3350  ;;  %6948 = vmatpush3.msra.mxu0 %v8047_v28  ;;  %6949 = vmatprep.mubr.msk.f32.mxu0 %vm7380_vm1, %v8771_v54  ;;  %v3414_v32 = vmul.f32 %v7194_v11, %v8171_v35  ;;  %v8780_v11 = vld [vmem:[#allocation20_spill] sm:$0xff] }
 0x43f   :  { %v3354_v7 = vpop.xlane.xlu1 %3353  ;;  %6957 = vmatprep.subr.mxu0 %v8771_v54  ;;  %v3416_v56 = vmul.f32 %v7196_v31, %v8169_v14 }
 0x440   :  { %7205 = vrcp.f32 %v3354_v7 }
 0x441   :  { %v7198_v19 = vpop.eup %7197  ;;  %7207 = vrcp.f32 %v3351_v57  ;;  %5919 = vrot.lane.b32.xlu0 %v3414_v32, %s7374_s10  ;;  %6950 = vmatmul.mubr.msk.f32.vlgmr.msra.gmra.mrb[58].mxu0 %vm728_vm2, %v3414_v32 }
 0x442   :  { %v7200_v40 = vpop.eup %7199  ;;  %v3360_v1 = vpop.xlane.xlu0 %3359  ;;  %6958 = vmatpush3.msra.mxu0 %v7987_v6  ;;  %5921 = vrot.lane.b32.xlu1 %v3416_v56, %s7374_s10  ;;  %v3418_v35 = vmul.f32 %v7198_v19, %v8181_v27  ;;  %v8772_v27 = vld [vmem:[#allocation19_spill] sm:$0xff] }
 0x443   :  { %6955 = vmatmul.mubr.msk.f32.vlgmr.msra.gmra.mrb[58].mxu1 %vm728_vm2, %v3416_v56  ;;  %v3357_v28 = vpop.xlane.xlu1 %3356  ;;  %6959 = vmatprep.mubr.msk.f32.mxu0 %vm7380_vm1, %v8771_v54  ;;  %v3420_v14 = vmul.f32 %v7200_v40, %v8179_v24 }
 0x444   :  { %6963 = vmatpush3.msra.mxu1 %v8003_v25  ;;  %7209 = vrcp.f32 %v3357_v28  ;;  %6964 = vmatprep.mubr.msk.f32.mxu1 %vm7380_vm1, %v8771_v54 }
 0x445   :  { %v7202_v34 = vpop.eup %7201  ;;  %6967 = vmatprep.subr.mxu0 %v8771_v54  ;;  %6972 = vmatprep.subr.mxu1 %v8771_v54  ;;  %7211 = vrcp.f32 %v3360_v1 }
 0x446   :  { %v7204_v6 = vpop.eup %7203  ;;  %v3366_v41 = vpop.xlane.xlu0 %3365  ;;  %5931 = vrot.lane.b32.xlu0 %v3418_v35, %s7384_s26  ;;  %6960 = vmatmul.mubr.msk.f32.vlgmr.msra.gmra.mrb[60].mxu0 %vm728_vm2, %v3418_v35  ;;  %v3422_v20 = vmul.f32 %v7202_v34, %v8191_v37 }
 0x447   :  { %6968 = vmatpush3.msra.mxu0 %v7999_v15  ;;  %5933 = vrot.lane.b32.xlu1 %v3420_v14, %s7384_s26  ;;  %v3363_v25 = vpop.xlane.xlu1 %3362  ;;  %v3424_v24 = vmul.f32 %v7204_v6, %v8189_v3 }
 0x448   :  { %6965 = vmatmul.mubr.msk.f32.vlgmr.msra.gmra.mrb[60].mxu1 %vm728_vm2, %v3420_v14  ;;  %6969 = vmatprep.mubr.msk.f32.mxu0 %vm7380_vm1, %v8771_v54  ;;  %7213 = vrcp.f32 %v3363_v25 }
 0x449   :  { %6973 = vmatpush3.msra.mxu1 %v8772_v27  ;;  %6974 = vmatprep.mubr.msk.f32.mxu1 %vm7380_vm1, %v8771_v54  ;;  %7215 = vrcp.f32 %v3366_v41 }
 0x44a   :  { %v7206_v10 = vpop.eup %7205  ;;  %6977 = vmatprep.subr.mxu0 %v8771_v54  ;;  %6982 = vmatprep.subr.mxu1 %v8771_v54  ;;  %v3372_v15 = vpop.xlane.xlu0 %3371 }
 0x44b   :  { %v7208_v13 = vpop.eup %7207  ;;  %5935 = vrot.lane.b32.xlu0 %v3422_v20, %s7384_s26  ;;  %6970 = vmatmul.mubr.msk.f32.vlgmr.msra.gmra.mrb[62].mxu0 %vm728_vm2, %v3422_v20  ;;  %v3369_v3 = vpop.xlane.xlu1 %3368  ;;  %v3428_v37 = vmul.f32 %v7206_v10, %v8199_v44  ;;  %v8775_v44 = vld [vmem:[#allocation23_spill] sm:$0xff] }
 0x44c   :  { %6978 = vmatpush3.msra.mxu0 %v8773_v53  ;;  %5937 = vrot.lane.b32.xlu1 %v3424_v24, %s7384_s26  ;;  %v3426_v61 = vmul.f32 %v7208_v13, %v8201_v55  ;;  %7217 = vrcp.f32 %v3369_v3  ;;  %v8776_v55 = vld [vmem:[#allocation24_spill] sm:$0xff] }
 0x44d   :  { %6975 = vmatmul.mubr.msk.f32.vlgmr.msra.gmra.mrb[62].mxu1 %vm728_vm2, %v3424_v24  ;;  %6979 = vmatprep.mubr.msk.f32.mxu0 %vm7380_vm1, %v8771_v54  ;;  %7219 = vrcp.f32 %v3372_v15 }
 0x44e   :  { %v7210_v12 = vpop.eup %7209  ;;  %6983 = vmatpush3.msra.mxu1 %v8774_v50  ;;  %6984 = vmatprep.mubr.msk.f32.mxu1 %vm7380_vm1, %v8771_v54  ;;  %v3378_v48 = vpop.xlane.xlu0 %3377 }
 0x44f   :  { %6987 = vmatprep.subr.mxu0 %v8771_v54  ;;  %6992 = vmatprep.subr.mxu1 %v8771_v54  ;;  %v3375_v45 = vpop.xlane.xlu1 %3374  ;;  %v7212_v22 = vpop.eup %7211  ;;  %v3430_v58 = vmul.f32 %v7210_v12, %v8213_v4 }
 0x450   :  { %5939 = vrot.lane.b32.xlu0 %v3426_v61, %s7384_s26  ;;  %6980 = vmatmul.mubr.msk.f32.vlgmr.msra.gmra.mrb[64].mxu0 %vm728_vm2, %v3426_v61  ;;  %v3432_v8 = vmul.f32 %v7212_v22, %v8206_v59  ;;  %7221 = vrcp.f32 %v3375_v45  ;;  %v8778_v59 = vld [vmem:[#allocation18_spill] sm:$0xff] }
 0x451   :  { %6988 = vmatpush3.msra.mxu0 %v8775_v44  ;;  %5941 = vrot.lane.b32.xlu1 %v3428_v37, %s7384_s26  ;;  %7223 = vrcp.f32 %v3378_v48 }
 0x452   :  { %6985 = vmatmul.mubr.msk.f32.vlgmr.msra.gmra.mrb[64].mxu1 %vm728_vm2, %v3428_v37  ;;  %6989 = vmatprep.mubr.msk.f32.mxu0 %vm7380_vm1, %v8771_v54  ;;  %v7214_v26 = vpop.eup %7213  ;;  %v3384_v0 = vpop.xlane.xlu0 %3383 }
 0x453   :  { %6993 = vmatpush3.msra.mxu1 %v8776_v55  ;;  %6994 = vmatprep.mubr.msk.f32.mxu1 %vm7380_vm1, %v8771_v54  ;;  %v7216_v43 = vpop.eup %7215  ;;  %v3381_v4 = vpop.xlane.xlu1 %3380  ;;  %v3434_v51 = vmul.f32 %v7214_v26, %v8223_v29  ;;  %v8779_v29 = vld [vmem:[#allocation26_spill] sm:$0xff] }
 0x454   :  { %6997 = vmatprep.subr.mxu0 %v8771_v54  ;;  %7002 = vmatprep.subr.mxu1 %v8771_v54  ;;  %7225 = vrcp.f32 %v3381_v4  ;;  %v3436_v9 = vmul.f32 %v7216_v43, %v8216_v2 }
 0x455   :  { %5945 = vrot.lane.b32.xlu1 %v3432_v8, %s7384_s26  ;;  %5943 = vrot.lane.b32.xlu0 %v3430_v58, %s7384_s26  ;;  %7227 = vrcp.f32 %v3384_v0 }
 0x456   :  { %6995 = vmatmul.mubr.msk.f32.vlgmr.msra.gmra.mrb[66].mxu1 %vm728_vm2, %v3432_v8  ;;  %6990 = vmatmul.mubr.msk.f32.vlgmr.msra.gmra.mrb[66].mxu0 %vm728_vm2, %v3430_v58  ;;  %v7218_v62 = vpop.eup %7217 }
 0x457   :  { %7003 = vmatpush3.msra.mxu1 %v8777_v60  ;;  %6998 = vmatpush3.msra.mxu0 %v8778_v59  ;;  %v7220_v30 = vpop.eup %7219  ;;  %v3438_v2 = vmul.f32 %v7218_v62, %v8231_v5  ;;  %v719_v19 = vpop.permute.xlu1 %718  ;;  %v7386_v60 = vmov 1983009808  }
 0x458   :  { %6999 = vmatprep.mubr.msk.f32.mxu0 %vm7380_vm1, %v8771_v54  ;;  %7004 = vmatprep.mubr.msk.f32.mxu1 %vm7380_vm1, %v8771_v54  ;;  %v3440_v31 = vmul.f32 %v7220_v30, %v8225_v42  ;;  %v6006_v59 = vunpack.c.l.s4 %v7386_v60 }
 0x459   :  { %7007 = vmatprep.subr.mxu0 %v8771_v54  ;;  %7012 = vmatprep.subr.mxu1 %v8771_v54 }
 0x45a   :  { %5957 = vrot.lane.b32.xlu1 %v3436_v9, %s7385_s27  ;;  %7005 = vmatmul.mubr.msk.f32.vlgmr.msra.gmra.mrb[68].mxu1 %vm728_vm2, %v3436_v9  ;;  %v7222_v57 = vpop.eup %7221  ;;  %v6007_v62 = vunpack.c.0.s8 %v6006_v59 }
 0x45b   :  { %7013 = vmatpush3.msra.mxu1 %v8779_v29  ;;  %5955 = vrot.lane.b32.xlu0 %v3434_v51, %s7385_s27  ;;  %v7224_v7 = vpop.eup %7223  ;;  %v3442_v42 = vmul.f32 %v7222_v57, %v8239_v38  ;;  %v717_v38 = vpop.permute.xlu0 %716 }
 0x45c   :  { %7000 = vmatmul.mubr.msk.f32.vlgmr.msra.gmra.mrb[68].mxu0 %vm728_vm2, %v3434_v51  ;;  %7014 = vmatprep.mubr.msk.f32.mxu1 %vm7380_vm1, %v8771_v54  ;;  %v3444_v32 = vmul.f32 %v7224_v7, %v8233_v39  ;;  %v6008_v51 = vlaneseq }
 0x45d   :  { %7008 = vmatpush3.msra.mxu0 %v8780_v11  ;;  %7009 = vmatprep.mubr.msk.f32.mxu0 %vm7380_vm1, %v8771_v54 }
 0x45e   :  { %7017 = vmatprep.subr.mxu0 %v8771_v54  ;;  %7022 = vmatprep.subr.mxu1 %v8771_v54  ;;  %v7226_v5 = vpop.eup %7225  ;;  %v8533_v30 = vshrl.u32 %v6008_v51, 7 }
 0x45f   :  { %5961 = vrot.lane.b32.xlu1 %v3440_v31, %s7385_s27  ;;  %7015 = vmatmul.mubr.msk.f32.vlgmr.msra.gmra.mrb[70].mxu1 %vm728_vm2, %v3440_v31  ;;  %v7228_v56 = vpop.eup %7227 }
 0x460   :  { %7023 = vmatpush3.msra.mxu1 %v8309_v21  ;;  %5959 = vrot.lane.b32.xlu0 %v3438_v2, %s7385_s27  ;;  %v8476_v21 = vmul.f32 %v7226_v5, %v8247_v33  ;;  %v8481_v39 = vmul.f32 %v7228_v56, %v8243_v23 }
 0x461   :  { %7010 = vmatmul.mubr.msk.f32.vlgmr.msra.gmra.mrb[70].mxu0 %vm728_vm2, %v3438_v2  ;;  %7024 = vmatprep.mubr.msk.f32.mxu1 %vm7380_vm1, %v8771_v54 }
 0x462   :  { %7018 = vmatpush3.msra.mxu0 %v8339_v36  ;;  %7019 = vmatprep.mubr.msk.f32.mxu0 %vm7380_vm1, %v8771_v54 }
 0x463   :  { %7027 = vmatprep.subr.mxu0 %v8771_v54  ;;  %7032 = vmatprep.subr.mxu1 %v8771_v54 }
 0x464   :  { %5965 = vrot.lane.b32.xlu1 %v3444_v32, %s7385_s27  ;;  %7025 = vmatmul.mubr.msk.f32.vlgmr.msra.gmra.mrb[72].mxu1 %vm728_vm2, %v3444_v32 }
 0x465   :  { %5963 = vrot.lane.b32.xlu0 %v3442_v42, %s7385_s27  ;;  %7020 = vmatmul.mubr.msk.f32.vlgmr.msra.gmra.mrb[72].mxu0 %vm728_vm2, %v3442_v42 }
 0x466   :  { %7028 = vmatpush3.msra.mxu0 %v717_v38  ;;  %7033 = vmatpush3.msra.mxu1 %v719_v19 }
 0x467   :  { %7029 = vmatprep.mubr.msk.f32.mxu0 %vm7380_vm1, %v8771_v54  ;;  %7034 = vmatprep.mubr.msk.f32.mxu1 %vm7380_vm1, %v8771_v54 }
 0x468   :  { %7035 = vmatmul.mubr.msk.f32.vlgmr.msra.gmra.mrb[74].mxu1 %vm728_vm2, %v8481_v39 }
 0x469   :  { %7030 = vmatmul.mubr.msk.f32.vlgmr.msra.gmra.mrb[74].mxu0 %vm728_vm2, %v8476_v21 }
 0x49b   :  { %v5910_v36 = vpop.permute.xlu1 %5909 }
 0x49c   :  { %v5980_v10 = vsel %vm728_vm2, %v8264_v49, %v5910_v36 }
 0x49f   :  { %v5908_v33 = vpop.permute.xlu0 %5907 }
 0x4a0   :  { %v5979_v24 = vsel %vm728_vm2, %v8254_v46, %v5908_v33 }
 0x4a3   :  { %v5914_v1 = vpop.permute.xlu1 %5913 }
 0x4a4   :  { %v5982_v46 = vsel %vm728_vm2, %v8295_v47, %v5914_v1 }
 0x4a7   :  { %v5912_v40 = vpop.permute.xlu0 %5911 }
 0x4a8   :  { %v5981_v12 = vsel %vm728_vm2, %v8273_v16, %v5912_v40 }
 0x4ab   :  { %v5918_v14 = vpop.permute.xlu1 %5917 }
 0x4ac   :  { %v5984_v16 = vsel %vm728_vm2, %v8312_v52, %v5918_v14  ;;  %v8536_v52 = vsub.s32 %v6007_v62, %v8533_v30 }
 0x4af   :  { %v8491_v23 = vpop.f32.mrb[44].mxu0  ;;  %v5916_v28 = vpop.permute.xlu0 %5915 }
 0x4b0   :  { %v6881_v35 = vpop.f32.mrb[45].mxu0  ;;  %v5983_v55 = vsel %vm728_vm2, %v8283_v17, %v5916_v28 }
 0x4b3   :  { %v8493_v34 = vpop.permute.xlu0 %5919  ;;  %v8495_v6 = vpop.f32.mrb[44].mxu1 }
 0x4b4   :  { %v8497_v54 = vpop.permute.xlu1 %5921  ;;  %v6886_v41 = vpop.f32.mrb[45].mxu1 }
 0x4b7   :  { %v8499_v25 = vpop.f32.mrb[46].mxu0 }
 0x4b8   :  { %v5932_v27 = vpop.permute.xlu0 %5931  ;;  %v6891_v20 = vpop.f32.mrb[47].mxu0 }
 0x4b9   :  { %v5987_v15 = vsel %vm5889_vm3, %v5979_v24, %v5932_v27  ;;  %v5934_v13 = vpop.permute.xlu1 %5933 }
 0x4ba   :  { %v5988_v3 = vsel %vm5889_vm3, %v5980_v10, %v5934_v13 }
 0x4bb   :  { %v8507_v53 = vpop.f32.mrb[48].mxu0 }
 0x4bc   :  { %v6901_v37 = vpop.f32.mrb[49].mxu0 }
 0x4bd   :  { %v5936_v50 = vpop.permute.xlu0 %5935 }
 0x4be   :  { %v5989_v61 = vsel %vm5889_vm3, %v5981_v12, %v5936_v50  ;;  %v5938_v45 = vpop.permute.xlu1 %5937 }
 0x4bf   :  { %v5990_v49 = vsel %vm5889_vm3, %v5982_v46, %v5938_v45  ;;  %v8515_v22 = vpop.f32.mrb[50].mxu0  ;;  %v8517_v48 = vpop.f32.mrb[46].mxu1 }
 0x4c0   :  { %v6896_v44 = vpop.f32.mrb[47].mxu1  ;;  %v6911_v58 = vpop.f32.mrb[51].mxu0 }
 0x4c2   :  { %v5940_v8 = vpop.permute.xlu0 %5939 }
 0x4c3   :  { %v8524_v47 = vsel %vm5889_vm3, %v5983_v55, %v5940_v8  ;;  %v5942_v26 = vpop.permute.xlu1 %5941 }
 0x4c4   :  { %v8527_v43 = vsel %vm5889_vm3, %v5984_v16, %v5942_v26 }
 0x4c7   :  { %v8529_v4 = vpop.permute.xlu0 %5943  ;;  %v8531_v0 = vpop.permute.xlu1 %5945 }
 0x4cc   :  { %v5958_v9 = vpop.permute.xlu1 %5957 }
 0x4cd   :  { %v5956_v17 = vpop.permute.xlu0 %5955  ;;  %v5996_v2 = vsel %vm5898_vm4, %v5988_v3, %v5958_v9 }
 0x4ce   :  { %v5995_v57 = vsel %vm5898_vm4, %v5987_v15, %v5956_v17 }
 0x4d1   :  { %v5962_v29 = vpop.permute.xlu1 %5961 }
 0x4d2   :  { %v5960_v11 = vpop.permute.xlu0 %5959  ;;  %v5998_v31 = vsel %vm5898_vm4, %v5990_v49, %v5962_v29 }
 0x4d3   :  { %v5997_v7 = vsel %vm5898_vm4, %v5989_v61, %v5960_v11  ;;  %v6189_v42 = vcombine.low %v5996_v2, %v5998_v31  ;;  %v6190_v5 = vcombine.high %v5996_v2, %v5998_v31 }
 0x4d4   :  { %v6173_v32 = vcombine.low %v5995_v57, %v5997_v7  ;;  %v6174_v56 = vcombine.high %v5995_v57, %v5997_v7 }
 0x4d5   :  { %v8543_v38 = vrot.slane %v6189_v42, %v8536_v52  ;;  %v8546_v19 = vrot.slane %v6190_v5, %v8536_v52 }
 0x4d6   :  { %v8549_v33 = vrot.slane %v6173_v32, %v8536_v52  ;;  %v8552_v36 = vrot.slane %v6174_v56, %v8536_v52 }
 0x4d8   :  { %v6237_v40 = vcombine.low %v8549_v33, %v8543_v38  ;;  %v6238_v1 = vcombine.high %v8549_v33, %v8543_v38  ;;  %v6253_v28 = vcombine.low %v8552_v36, %v8546_v19  ;;  %v6254_v14 = vcombine.high %v8552_v36, %v8546_v19 }
 0x4f4   :  { %v8562_v35 = vpop.f32.mrb[48].mxu1 }
 0x4f5   :  { %v6906_v41 = vpop.f32.mrb[49].mxu1 }
 0x4f8   :  { %v8564_v24 = vpop.f32.mrb[50].mxu1 }
 0x4f9   :  { %v6916_v27 = vpop.f32.mrb[51].mxu1 }
 0x4fc   :  { %v4175_v20 = vpop.f32.mrb[52].mxu1 }
 0x4fd   :  { %5795 = vrot.lane.b32.xlu1 %v4175_v20, %s7374_s10  ;;  %v6926_v10 = vpop.f32.mrb[53].mxu1 }
 0x500   :  { %v4102_v15 = vpop.f32.mrb[52].mxu0 }
 0x501   :  { %v6921_v13 = vpop.f32.mrb[53].mxu0  ;;  %5793 = vrot.lane.b32.xlu0 %v4102_v15, %s7374_s10 }
 0x504   :  { %v4321_v3 = vpop.f32.mrb[54].mxu1 }
 0x505   :  { %5799 = vrot.lane.b32.xlu1 %v4321_v3, %s7374_s10  ;;  %v6936_v37 = vpop.f32.mrb[55].mxu1 }
 0x508   :  { %v4248_v12 = vpop.f32.mrb[54].mxu0 }
 0x509   :  { %v6931_v50 = vpop.f32.mrb[55].mxu0  ;;  %5797 = vrot.lane.b32.xlu0 %v4248_v12, %s7374_s10 }
 0x50c   :  { %v4467_v46 = vpop.f32.mrb[56].mxu1 }
 0x50d   :  { %5803 = vrot.lane.b32.xlu1 %v4467_v46, %s7374_s10  ;;  %v6946_v61 = vpop.f32.mrb[57].mxu1 }
 0x510   :  { %v4394_v45 = vpop.f32.mrb[56].mxu0 }
 0x511   :  { %v6941_v49 = vpop.f32.mrb[57].mxu0  ;;  %5801 = vrot.lane.b32.xlu0 %v4394_v45, %s7374_s10 }
 0x514   :  { %v4540_v44 = vpop.f32.mrb[58].mxu0 }
 0x515   :  { %v6951_v58 = vpop.f32.mrb[59].mxu0  ;;  %5805 = vrot.lane.b32.xlu0 %v4540_v44, %s7374_s10  ;;  %v5964_v44 = vpop.permute.xlu0 %5963 }
 0x516   :  { %v4613_v55 = vpop.f32.mrb[58].mxu1  ;;  %v5966_v58 = vpop.permute.xlu1 %5965 }
 0x517   :  { %5807 = vrot.lane.b32.xlu1 %v4613_v55, %s7374_s10  ;;  %v6956_v8 = vpop.f32.mrb[59].mxu1  ;;  %s7388_s10 = smov 32  }
 0x519   :  { %v4686_v16 = vpop.f32.mrb[60].mxu0 }
 0x51a   :  { %v6961_v26 = vpop.f32.mrb[61].mxu0  ;;  %5825 = vrot.lane.b32.xlu0 %v4686_v16, %s7384_s26 }
 0x51b   :  { %v4759_v60 = vpop.f32.mrb[60].mxu1 }
 0x51c   :  { %5827 = vrot.lane.b32.xlu1 %v4759_v60, %s7384_s26  ;;  %v6966_v59 = vpop.f32.mrb[61].mxu1 }
 0x51e   :  { %v4832_v51 = vpop.f32.mrb[62].mxu0 }
 0x51f   :  { %v6971_v9 = vpop.f32.mrb[63].mxu0  ;;  %5829 = vrot.lane.b32.xlu0 %v4832_v51, %s7384_s26 }
 0x520   :  { %v4905_v17 = vpop.f32.mrb[62].mxu1 }
 0x521   :  { %5831 = vrot.lane.b32.xlu1 %v4905_v17, %s7384_s26  ;;  %v6976_v62 = vpop.f32.mrb[63].mxu1 }
 0x523   :  { %v4978_v29 = vpop.f32.mrb[64].mxu0 }
 0x524   :  { %v6981_v2 = vpop.f32.mrb[65].mxu0  ;;  %5833 = vrot.lane.b32.xlu0 %v4978_v29, %s7384_s26 }
 0x525   :  { %v5051_v11 = vpop.f32.mrb[64].mxu1 }
 0x526   :  { %5835 = vrot.lane.b32.xlu1 %v5051_v11, %s7384_s26  ;;  %v6986_v31 = vpop.f32.mrb[65].mxu1 }
 0x529   :  { %v5124_v57 = vpop.f32.mrb[66].mxu0  ;;  %v5197_v7 = vpop.f32.mrb[66].mxu1 }
 0x52a   :  { %v6991_v42 = vpop.f32.mrb[67].mxu0  ;;  %5837 = vrot.lane.b32.xlu0 %v5124_v57, %s7384_s26  ;;  %5839 = vrot.lane.b32.xlu1 %v5197_v7, %s7384_s26  ;;  %v6996_v5 = vpop.f32.mrb[67].mxu1  ;;  %v7387_v7 = vmov 1934713408  }
 0x52d   :  { %v5343_v32 = vpop.f32.mrb[68].mxu1 }
 0x52e   :  { %5859 = vrot.lane.b32.xlu1 %v5343_v32, %s7385_s27  ;;  %v7006_v56 = vpop.f32.mrb[69].mxu1 }
 0x52f   :  { %v5270_v41 = vpop.f32.mrb[68].mxu0 }
 0x530   :  { %v7001_v27 = vpop.f32.mrb[69].mxu0  ;;  %5857 = vrot.lane.b32.xlu0 %v5270_v41, %s7385_s27 }
 0x532   :  { %v5489_v20 = vpop.f32.mrb[70].mxu1 }
 0x533   :  { %5863 = vrot.lane.b32.xlu1 %v5489_v20, %s7385_s27  ;;  %v7016_v10 = vpop.f32.mrb[71].mxu1 }
 0x534   :  { %v5416_v15 = vpop.f32.mrb[70].mxu0 }
 0x535   :  { %v7011_v13 = vpop.f32.mrb[71].mxu0  ;;  %5861 = vrot.lane.b32.xlu0 %v5416_v15, %s7385_s27 }
 0x537   :  { %v5635_v3 = vpop.f32.mrb[72].mxu1 }
 0x538   :  { %v5562_v37 = vpop.f32.mrb[72].mxu0  ;;  %5867 = vrot.lane.b32.xlu1 %v5635_v3, %s7385_s27  ;;  %v7026_v12 = vpop.f32.mrb[73].mxu1 }
 0x539   :  { %5865 = vrot.lane.b32.xlu0 %v5562_v37, %s7385_s27  ;;  %v7021_v50 = vpop.f32.mrb[73].mxu0 }
 0x53b   :  { %v5781_v46 = vpop.f32.mrb[74].mxu1 }
 0x53c   :  { %v5708_v61 = vpop.f32.mrb[74].mxu0  ;;  %5871 = vrot.lane.b32.xlu1 %v5781_v46, %s7385_s27  ;;  %v7036_v45 = vpop.f32.mrb[75].mxu1 }
 0x53d   :  { %5869 = vrot.lane.b32.xlu0 %v5708_v61, %s7385_s27  ;;  %v7031_v49 = vpop.f32.mrb[75].mxu0 }
 0x540   :  { %5969 = vrot.lane.b32.xlu1 %v8481_v39, %s7385_s27 }
 0x541   :  { %5967 = vrot.lane.b32.xlu0 %v8476_v21, %s7385_s27  ;;  %v6070_v21 = vunpack.c.l.s4 %v7387_v7 }
 0x543   :  { %v6071_v32 = vunpack.c.0.s8 %v6070_v21 }
 0x545   :  { %v8609_v61 = vsub.s32 %v6071_v32, %v8533_v30 }
 0x56f   :  { %v5796_v8 = vpop.permute.xlu1 %5795 }
 0x570   :  { %v5882_v56 = vsel %vm728_vm2, %v8495_v6, %v5796_v8 }
 0x573   :  { %v5794_v55 = vpop.permute.xlu0 %5793 }
 0x574   :  { %v5881_v15 = vsel %vm728_vm2, %v8491_v23, %v5794_v55 }
 0x577   :  { %v5800_v26 = vpop.permute.xlu1 %5799 }
 0x578   :  { %v5884_v41 = vsel %vm728_vm2, %v8517_v48, %v5800_v26  ;;  %v5986_v26 = vsel %vm728_vm2, %v8320_v63, %v8497_v54  ;;  %v8637_v63 = vrot.slane %v6238_v1, %v8609_v61  ;;  %v6000_v54 = vsel %vm5898_vm4, %v8527_v43, %v5966_v58 }
 0x57b   :  { %v5798_v16 = vpop.permute.xlu0 %5797 }
 0x57c   :  { %v5883_v13 = vsel %vm728_vm2, %v8499_v25, %v5798_v16  ;;  %v5985_v16 = vsel %vm728_vm2, %v8291_v18, %v8493_v34  ;;  %v8631_v18 = vrot.slane %v6237_v40, %v8609_v61  ;;  %v5999_v34 = vsel %vm5898_vm4, %v8524_v47, %v5964_v44 }
 0x57f   :  { %v5804_v59 = vpop.permute.xlu1 %5803 }
 0x580   :  { %v5886_v40 = vsel %vm728_vm2, %v8562_v35, %v5804_v59 }
 0x583   :  { %v5802_v60 = vpop.permute.xlu0 %5801 }
 0x587   :  { %v5806_v51 = vpop.permute.xlu0 %5805 }
 0x588   :  { %v5887_v38 = vsel %vm728_vm2, %v8515_v22, %v5806_v51 }
 0x589   :  { %v5808_v9 = vpop.permute.xlu1 %5807 }
 0x58a   :  { %v5888_v33 = vsel %vm728_vm2, %v8564_v24, %v5808_v9 }
 0x58c   :  { %v5826_v17 = vpop.permute.xlu0 %5825 }
 0x58d   :  { %v5890_v6 = vsel %vm5889_vm3, %v5881_v15, %v5826_v17  ;;  %v5993_v17 = vsel %vm5889_vm3, %v5985_v16, %v8529_v4 }
 0x58e   :  { %v5828_v62 = vpop.permute.xlu1 %5827 }
 0x58f   :  { %v5891_v27 = vsel %vm5889_vm3, %v5882_v56, %v5828_v62  ;;  %v5994_v62 = vsel %vm5889_vm3, %v5986_v26, %v8531_v0 }
 0x591   :  { %v5830_v29 = vpop.permute.xlu0 %5829 }
 0x592   :  { %v5892_v12 = vsel %vm5889_vm3, %v5883_v13, %v5830_v29 }
 0x593   :  { %v5832_v2 = vpop.permute.xlu1 %5831 }
 0x594   :  { %v5893_v20 = vsel %vm5889_vm3, %v5884_v41, %v5832_v2 }
 0x596   :  { %v5834_v11 = vpop.permute.xlu0 %5833 }
 0x598   :  { %v5836_v31 = vpop.permute.xlu1 %5835 }
 0x599   :  { %v5895_v43 = vsel %vm5889_vm3, %v5886_v40, %v5836_v31  ;;  %v8669_v31 = vrot.slane %v6254_v14, %v8609_v61 }
 0x59c   :  { %v5838_v39 = vpop.permute.xlu0 %5837  ;;  %v5840_v57 = vpop.permute.xlu1 %5839 }
 0x59d   :  { %v5896_v44 = vsel %vm5889_vm3, %v5887_v38, %v5838_v39  ;;  %v5897_v58 = vsel %vm5889_vm3, %v5888_v33, %v5840_v57 }
 0x5a0   :  { %v5860_v42 = vpop.permute.xlu1 %5859 }
 0x5a1   :  { %v5900_v3 = vsel %vm5898_vm4, %v5891_v27, %v5860_v42 }
 0x5a2   :  { %v5858_v5 = vpop.permute.xlu0 %5857 }
 0x5a3   :  { %v5899_v45 = vsel %vm5898_vm4, %v5890_v6, %v5858_v5  ;;  %v5885_v5 = vsel %vm728_vm2, %v8507_v53, %v5802_v60 }
 0x5a4   :  { %v5894_v1 = vsel %vm5889_vm3, %v5885_v5, %v5834_v11  ;;  %v8663_v11 = vrot.slane %v6253_v28, %v8609_v61 }
 0x5a5   :  { %v5864_v10 = vpop.permute.xlu1 %5863 }
 0x5a6   :  { %v5902_v37 = vsel %vm5898_vm4, %v5893_v20, %v5864_v10 }
 0x5a7   :  { %v5862_v48 = vpop.permute.xlu0 %5861  ;;  %v6019_v50 = vcombine.low %v5900_v3, %v5902_v37  ;;  %v6020_v46 = vcombine.high %v5900_v3, %v5902_v37 }
 0x5a8   :  { %v5901_v23 = vsel %vm5898_vm4, %v5892_v12, %v5862_v48 }
 0x5a9   :  { %v6003_v49 = vcombine.low %v5899_v45, %v5901_v23  ;;  %v6004_v25 = vcombine.high %v5899_v45, %v5901_v23  ;;  %v6027_v55 = vrot.slane %v6019_v50, %v8536_v52  ;;  %v6034_v8 = vrot.slane %v6020_v46, %v8536_v52 }
 0x5aa   :  { %v5868_v30 = vpop.permute.xlu1 %5867 }
 0x5ab   :  { %v6011_v29 = vrot.slane %v6003_v49, %v8536_v52  ;;  %v6018_v2 = vrot.slane %v6004_v25, %v8536_v52  ;;  %v5866_v7 = vpop.permute.xlu0 %5865  ;;  %v5904_v53 = vsel %vm5898_vm4, %v5895_v43, %v5868_v30 }
 0x5ac   :  { %v5903_v35 = vsel %vm5898_vm4, %v5894_v1, %v5866_v7 }
 0x5ad   :  { %v6067_v4 = vcombine.low %v6011_v29, %v6027_v55  ;;  %v6068_v0 = vcombine.high %v6011_v29, %v6027_v55  ;;  %v6083_v21 = vcombine.low %v6018_v2, %v6034_v8  ;;  %v6084_v42 = vcombine.high %v6018_v2, %v6034_v8 }
 0x5ae   :  { %v5872_v47 = vpop.permute.xlu1 %5871 }
 0x5af   :  { %v5870_v32 = vpop.permute.xlu0 %5869  ;;  %v5906_v22 = vsel %vm5898_vm4, %v5897_v58, %v5872_v47  ;;  %v8672_v39 = vrot.slane %v6067_v4, %v8609_v61  ;;  %v6082_v57 = vrot.slane %v6068_v0, %v8609_v61  ;;  %v8680_v15 = vrot.slane %v6083_v21, %v8609_v61 }
 0x5b0   :  { %v5905_v60 = vsel %vm5898_vm4, %v5896_v44, %v5870_v32  ;;  %v6051_v51 = vcombine.low %v5904_v53, %v5906_v22  ;;  %v6052_v9 = vcombine.high %v5904_v53, %v5906_v22  ;;  %v6098_v19 = vrot.slane %v6084_v42, %v8609_v61 }
 0x5b1   :  { %v6035_v59 = vcombine.low %v5903_v35, %v5905_v60  ;;  %v6036_v24 = vcombine.high %v5903_v35, %v5905_v60 }
 0x5b2   :  { %v5970_v56 = vpop.permute.xlu1 %5969  ;;  %v6059_v20 = vrot.slane %v6051_v51, %v8536_v52  ;;  %v6066_v28 = vrot.slane %v6052_v9, %v8536_v52 }
 0x5b3   :  { %v6043_v41 = vrot.slane %v6035_v59, %v8536_v52  ;;  %v6050_v27 = vrot.slane %v6036_v24, %v8536_v52  ;;  %v5968_v10 = vpop.permute.xlu0 %5967  ;;  %v6002_v14 = vsel %vm5898_vm4, %v5994_v62, %v5970_v56 }
 0x5b4   :  { %v6001_v36 = vsel %vm5898_vm4, %v5993_v17, %v5968_v10  ;;  %v6221_v50 = vcombine.low %v6000_v54, %v6002_v14  ;;  %v6222_v46 = vcombine.high %v6000_v54, %v6002_v14 }
 0x5b5   :  { %v6099_v13 = vcombine.low %v6043_v41, %v6059_v20  ;;  %v6100_v3 = vcombine.high %v6043_v41, %v6059_v20  ;;  %v6115_v37 = vcombine.low %v6050_v27, %v6066_v28  ;;  %v6116_v6 = vcombine.high %v6050_v27, %v6066_v28 }
 0x5b6   :  { %v6205_v12 = vcombine.low %v5999_v34, %v6001_v36  ;;  %v6206_v48 = vcombine.high %v5999_v34, %v6001_v36  ;;  %v6229_v16 = vrot.slane %v6221_v50, %v8536_v52  ;;  %v6236_v26 = vrot.slane %v6222_v46, %v8536_v52 }
 0x5b7   :  { %v6107_v45 = vrot.slane %v6099_v13, %v8609_v61  ;;  %v6114_v23 = vrot.slane %v6100_v3, %v8609_v61  ;;  %v6123_v49 = vrot.slane %v6115_v37, %v8609_v61  ;;  %v6130_v25 = vrot.slane %v6116_v6, %v8609_v61 }
 0x5b8   :  { %v6213_v55 = vrot.slane %v6205_v12, %v8536_v52  ;;  %v6220_v8 = vrot.slane %v6206_v48, %v8536_v52 }
 0x5b9   :  { %v6136_v30 = vcombine.high %v8680_v15, %v6123_v49  ;;  %v6132_v17 = vcombine.high %v8672_v39, %v6107_v45  ;;  %v6137_v62 = vcombine.low %v6098_v19, %v6130_v25  ;;  %v6133_v29 = vcombine.low %v6082_v57, %v6114_v23 }
 0x5ba   :  { %v6269_v2 = vcombine.low %v6213_v55, %v6229_v16  ;;  %v6270_v7 = vcombine.high %v6213_v55, %v6229_v16  ;;  %v6285_v34 = vcombine.low %v6220_v8, %v6236_v26  ;;  %v6286_v54 = vcombine.high %v6220_v8, %v6236_v26 }
 0x5bb   :  { %v6138_v4 = vcombine.high %v6098_v19, %v6130_v25  ;;  %v6134_v0 = vcombine.high %v6082_v57, %v6114_v23  ;;  %v6135_v21 = vcombine.low %v8680_v15, %v6123_v49  ;;  %v6131_v42 = vcombine.low %v8672_v39, %v6107_v45 }
 0x5bc   :  { %v6277_v40 = vrot.slane %v6269_v2, %v8609_v61  ;;  %v6284_v52 = vrot.slane %v6270_v7, %v8609_v61  ;;  %v6293_v5 = vrot.slane %v6285_v34, %v8609_v61  ;;  %v6300_v38 = vrot.slane %v6286_v54, %v8609_v61 }
 0x5be   :  { %v6306_v33 = vcombine.high %v8663_v11, %v6293_v5  ;;  %v6302_v47 = vcombine.high %v8631_v18, %v6277_v40  ;;  %v6307_v1 = vcombine.low %v8669_v31, %v6300_v38  ;;  %v6303_v43 = vcombine.low %v8637_v63, %v6284_v52 }
 0x5bf   :  { %v6308_v44 = vcombine.high %v8669_v31, %v6300_v38  ;;  %v6304_v58 = vcombine.high %v8637_v63, %v6284_v52  ;;  %v6305_v32 = vcombine.low %v8663_v11, %v6293_v5  ;;  %v6301_v35 = vcombine.low %v8631_v18, %v6277_v40 }
 0x5c0   :  { %6322 = vrot.lane.b32.xlu1 %v6306_v33, %s7388_s10  ;;  %6310 = vrot.lane.b32.xlu0 %v6302_v47, %s7388_s10 }
 0x5c4   :  { %6326 = vrot.lane.b32.xlu1 %v6307_v1, %s7378_s22  ;;  %6314 = vrot.lane.b32.xlu0 %v6303_v43, %s7378_s22 }
 0x5c8   :  { %6152 = vrot.lane.b32.xlu1 %v6136_v30, %s7388_s10  ;;  %6140 = vrot.lane.b32.xlu0 %v6132_v17, %s7388_s10 }
 0x5cc   :  { %6156 = vrot.lane.b32.xlu1 %v6137_v62, %s7378_s22  ;;  %6144 = vrot.lane.b32.xlu0 %v6133_v29, %s7378_s22 }
 0x5d0   :  { %6160 = vrot.lane.b32.xlu1 %v6138_v4, %s7377_s21  ;;  %6148 = vrot.lane.b32.xlu0 %v6134_v0, %s7377_s21 }
 0x5d4   :  { %6330 = vrot.lane.b32.xlu1 %v6308_v44, %s7377_s21  ;;  %6318 = vrot.lane.b32.xlu0 %v6304_v58, %s7377_s21 }
 0x632   :  { %v6323_v61 = vpop.permute.xlu1 %6322  ;;  %v6311_v18 = vpop.permute.xlu0 %6310 }
 0x633   :  { %v6336_v27 = vsel %vm98_vm0, %v6305_v32, %v6323_v61  ;;  %v6333_v20 = vsel %vm98_vm0, %v6301_v35, %v6311_v18 }
 0x636   :  { %v6327_v63 = vpop.permute.xlu1 %6326  ;;  %v6315_v53 = vpop.permute.xlu0 %6314 }
 0x63a   :  { %v6153_v60 = vpop.permute.xlu1 %6152  ;;  %v6141_v22 = vpop.permute.xlu0 %6140 }
 0x63b   :  { %v6168_v51 = vsel %vm98_vm0, %v6135_v21, %v6153_v60  ;;  %v6163_v9 = vsel %vm98_vm0, %v6131_v42, %v6141_v22 }
 0x63e   :  { %v6157_v59 = vpop.permute.xlu1 %6156  ;;  %v6145_v24 = vpop.permute.xlu0 %6144 }
 0x63f   :  { %v6169_v11 = vsel %vm6164_vm6, %v6168_v51, %v6157_v59  ;;  %v6165_v31 = vsel %vm6164_vm6, %v6163_v9, %v6145_v24 }
 0x642   :  { %v6161_v39 = vpop.permute.xlu1 %6160  ;;  %v6149_v57 = vpop.permute.xlu0 %6148 }
 0x643   :  { %v6170_v56 = vsel %vm6166_vm5, %v6169_v11, %v6161_v39  ;;  %v6167_v41 = vsel %vm6166_vm5, %v6165_v31, %v6149_v57 }
 0x644   :  { %6172 = vst [vmem:[#allocation10 + $0x8] sm:$0xff] %v6170_v56  ;;  %6171 = vst [vmem:[#allocation10] sm:$0xff] %v6167_v41 }
 0x645   :  { %7328 = shalt.err (!%p7325_p8)
}
 0x646   :  { %s7329_s24 = scalar_lea.hbm %s8758_s5, 256 }
 0x647   :  { %p7330_p9 = scmp.ne.s32.totalorder %s8758_s5, %s7329_s24  ;;  %p7333_p10 = scmp.lt.u32.totalorder %s7329_s24, %s8758_s5 }
 0x649   :  { %p7335_p11 = pnand %p7333_p10, %p7330_p9 }
 0x64b   :  { %7338 = shalt.err (!%p7335_p11)
}
 0x64c   :  { %6350 = dma.vmem_to_hbm [thread:$0]  %s6348_s29, 256, %s8758_s5, [#allocation4]   ;;  %v6337_v28 = vsel %vm6164_vm6, %v6336_v27, %v6327_v63  ;;  %v6334_v10 = vsel %vm6164_vm6, %v6333_v20, %v6315_v53  ;;  %v6331_v15 = vpop.permute.xlu1 %6330  ;;  %v6319_v19 = vpop.permute.xlu0 %6318 }
 0x64d   :  { %v6338_v36 = vsel %vm6166_vm5, %v6337_v28, %v6331_v15  ;;  %v6335_v14 = vsel %vm6166_vm5, %v6334_v10, %v6319_v19  ;;  %s7339_s18 = scalar_lea.vmem %s6358_s7, 256  ;;  %p7344_p13 = scmp.lt.s32.totalorder %s6358_s7, %s6358_s7 }
 0x64e   :  { %6340 = vst [vmem:[#allocation11 + $0x8] sm:$0xff] %v6338_v36  ;;  %6339 = vst [vmem:[#allocation11] sm:$0xff] %v6335_v14  ;;  %p7340_p12 = scmp.ne.s32.totalorder %s6358_s7, %s7339_s18  ;;  %p7345_p0 = scmp.lt.s32.totalorder %s7339_s18, %s7339_s18 }
 0x650   :  { %p7346_p1 = por %p7345_p0, %p7344_p13 }
 0x652   :  { %p7347_p2 = pnand %p7346_p1, %p7340_p12 }
 0x654   :  { %7350 = shalt.err (!%p7347_p2)
}
 0x655   :  { %s7351_s20 = scalar_lea.hbm %s8759_s6, 256 }
 0x656   :  { %p7352_p3 = scmp.ne.s32.totalorder %s8759_s6, %s7351_s20  ;;  %p7355_p4 = scmp.lt.u32.totalorder %s7351_s20, %s8759_s6 }
 0x658   :  { %p7357_p5 = pnand %p7355_p4, %p7352_p3 }
 0x65a   :  { %7360 = shalt.err (!%p7357_p5)
}
 0x65b   :  { %6360 = dma.vmem_to_hbm [thread:$0]  %s6358_s7, 256, %s8759_s6, [#allocation12]  }
 0x65c   :  { %7367 = dma.done.wait [#allocation4], 256  }
 0x65d   :  { %7368 = vsyncadd [#allocation4], 4294967040 }
 0x65e   :  { %7369 = dma.done.wait [#allocation12], 256  }
 0x65f   :  { %7370 = vsyncadd [#allocation12], 4294967040 }
 0x660   :  { %6367 = vsyncpa [#allocation3], 1 }
 0x661   :  { %6368 = vsyncpa [#allocation6], 1 }
 0x662   :  { %6369 = vsyncpa [#allocation9], 1 }
 0x663   :  { %6370 = vsyncpa [#allocation4], 1 }
 0x664   :  { %6371 = vsyncpa [#allocation12], 1 }

</bundles_post_ra>
